<compile_context>
chip_gen: v5e
topology: v5e:2x2
jax: 0.10.0
libtpu: 0.0.40
codegen_flags: <defaults>
</compile_context>

<pallas_src>
import jax
import jax.numpy as jnp
from jax.experimental import pallas as pl
from jax.experimental.pallas import tpu as pltpu


# --------------------------- kernels ---------------------------------------


def _layer1_kernel(a_ref, xw_ref, xr_ref, w1r_ref, b1_ref, h1_ref, agg_ref):
    """GraphConv1 + ReLU for one row tile, reducing over K tiles of A.

    agg accumulates A @ (x @ W1_rel): bf16 x bf16 MXU, f32 accumulator,
    lane-dense (H_pad = 128) thanks to the folded W1_rel.
    """
    k = pl.program_id(1)

    @pl.when(k == 0)
    def _():
        agg_ref[...] = jnp.zeros_like(agg_ref)

    agg_ref[...] += jnp.dot(a_ref[...], xw_ref[...],
                            preferred_element_type=jnp.float32)

    @pl.when(k == pl.num_programs(1) - 1)
    def _():
        root = jnp.dot(xr_ref[...], w1r_ref[...],
                       preferred_element_type=jnp.float32)
        h1 = jnp.maximum(root + agg_ref[...] + b1_ref[...], 0.0)
        h1_ref[...] = h1.astype(h1_ref.dtype)


def _layer2_kernel(a_ref, hk_ref, hi_ref, w2r_ref, w2n_ref, b2_ref, p_ref,
                   pool_ref, agg_ref):
    """GraphConv2 + ReLU + per-row-tile mean-pool partial (no cross-i state)."""
    k = pl.program_id(1)

    @pl.when(k == 0)
    def _():
        agg_ref[...] = jnp.zeros_like(agg_ref)

    # agg += A[i, k] @ h1[k]   (bf16 x bf16 -> f32)
    agg_ref[...] += jnp.dot(a_ref[...], hk_ref[...],
                            preferred_element_type=jnp.float32)

    @pl.when(k == pl.num_programs(1) - 1)
    def _():
        h2 = jnp.maximum(
            jnp.dot(hi_ref[...].astype(jnp.float32), w2r_ref[...],
                    preferred_element_type=jnp.float32)
            + jnp.dot(agg_ref[...], w2n_ref[...],
                      preferred_element_type=jnp.float32)
            + b2_ref[...],
            0.0)
        # Mean-pool partial of this row tile: P[:, tile_i] @ h2 -> (G, H_pad)
        pool_ref[...] = jnp.dot(p_ref[...], h2,
                                preferred_element_type=jnp.float32)


def _head_kernel(part_ref, wfc_ref, bfc_ref, out_ref):
    """Sum pooled partials over row tiles, then fc + sigmoid."""
    pooled = jnp.sum(part_ref[...], axis=0)          # (G, H_pad)
    logits = jnp.dot(pooled, wfc_ref[...],
                     preferred_element_type=jnp.float32) + bfc_ref[...]
    out_ref[...] = jax.nn.sigmoid(logits)


# --------------------------- wrapper ----------------------------------------


def _round_up(x, m):
    return ((x + m - 1) // m) * m


def _pick_tile(n_pad, cap):
    """Largest multiple of 128 that divides n_pad and is <= cap (>=128)."""
    t = max(128, min(n_pad, (cap // 128) * 128))
    while n_pad % t:
        t -= 128
    return t


def _vmem_limit(per_step_bytes):
    """Derived scoped-VMEM budget: footprint + headroom, capped for v7x."""
    return int(min(per_step_bytes + 24 * 2**20, 56 * 2**20))


def gnn_forward(x, edge_index, batch, num_graphs, params, *,
                tile_m_cap=512, tile_k_cap=1024):
    """x: [N, F] f32, edge_index: [2, E] int32 (row0=src, row1=dst),
    batch: [N] int32 graph id per node."""
    w1r, w1n, b1, w2r, w2n, b2, wfc, bfc = params
    N, F = x.shape
    H = w1r.shape[1]
    C = wfc.shape[1]
    G = num_graphs

    LANE = 128
    H_pad = _round_up(H, LANE)
    C_pad = _round_up(C, LANE)
    N_pad = _round_up(N, LANE)
    tile_m = _pick_tile(N_pad, tile_m_cap)
    tile_k = _pick_tile(N_pad, tile_k_cap)
    ni = N_pad // tile_m
    nk = N_pad // tile_k

    f32 = jnp.float32
    bf16 = jnp.bfloat16
    src, dst = edge_index[0], edge_index[1]

    # Dense adjacency built directly in bf16.  NOTE: bf16 is exact only for
    # edge multiplicities <= 256 between any node pair.
    a = jnp.zeros((N_pad, N_pad), bf16)
    a = a.at[dst, src].add(jnp.ones(src.shape, bf16))

    # Zero-padded node features (padded rows must stay exactly zero).
    x_p = jnp.zeros((N_pad, F), f32).at[:N, :].set(x.astype(f32))

    # Lane-padded weights.
    w1r_p = jnp.zeros((F, H_pad), f32).at[:, :H].set(w1r)
    w1n_p = jnp.zeros((F, H_pad), f32).at[:, :H].set(w1n)
    b1_p = jnp.zeros((1, H_pad), f32).at[:, :H].set(b1.reshape(1, H))
    w2r_p = jnp.zeros((H_pad, H_pad), f32).at[:H, :H].set(w2r)
    w2n_p = jnp.zeros((H_pad, H_pad), f32).at[:H, :H].set(w2n)
    b2_p = jnp.zeros((1, H_pad), f32).at[:, :H].set(b2.reshape(1, H))
    wfc_p = jnp.zeros((H_pad, C_pad), f32).at[:H, :C].set(wfc)
    bfc_p = jnp.zeros((1, C_pad), f32).at[:, :C].set(bfc.reshape(1, C))

    # Fold W1_rel into the streamed operand so the dominant layer-1 dot is
    # lane-dense: agg += A @ (x @ W1_rel).  Tiny (N x 4 x 32) GEMM in XLA.
    xw1 = (x_p @ w1n_p).astype(bf16)

    # Mean-pool matrix P[g, n] = (batch[n] == g) / |graph g|; padded cols = 0.
    counts = jnp.maximum(jnp.zeros((G,), f32).at[batch].add(1.0), 1.0)
    p = jnp.zeros((G, N_pad), f32).at[batch, jnp.arange(N)].set(
        1.0 / counts[batch])

    # Per-grid-step VMEM footprints (double-buffered inputs/outputs + scratch).
    l1_bytes = (2 * tile_m * tile_k * 2          # A (bf16)
                + 2 * tile_k * H_pad * 2         # x @ W1_rel (bf16)
                + 2 * tile_m * F * 4             # x root rows
                + 2 * (F * H_pad + H_pad) * 4    # weights / bias
                + 2 * tile_m * H_pad * 2         # h1 out (bf16)
                + tile_m * H_pad * 4)            # agg scratch
    l2_bytes = (2 * tile_m * tile_k * 2          # A (bf16)
                + 2 * tile_k * H_pad * 2         # h1 messages (bf16)
                + 2 * tile_m * H_pad * 2         # h1 root rows (bf16)
                + 2 * (2 * H_pad * H_pad + H_pad) * 4
                + 2 * G * tile_m * 4             # P columns
                + 2 * G * H_pad * 4              # pooled partial out
                + tile_m * H_pad * 4)            # agg scratch

    # ---- Kernel 1: GraphConv1 + ReLU -> h1 [N_pad, H_pad] bf16 ----
    h1 = pl.pallas_call(
        _layer1_kernel,
        out_shape=jax.ShapeDtypeStruct((N_pad, H_pad), bf16),
        grid_spec=pltpu.PrefetchScalarGridSpec(
            num_scalar_prefetch=0,
            grid=(ni, nk),
            in_specs=[
                pl.BlockSpec((tile_m, tile_k), lambda i, k: (i, k)),   # A
                pl.BlockSpec((tile_k, H_pad), lambda i, k: (k, 0)),    # x @ W1_rel
                pl.BlockSpec((tile_m, F), lambda i, k: (i, 0)),        # x root rows
                pl.BlockSpec((F, H_pad), lambda i, k: (0, 0)),         # W1_root
                pl.BlockSpec((1, H_pad), lambda i, k: (0, 0)),         # b1
            ],
            out_specs=pl.BlockSpec((tile_m, H_pad), lambda i, k: (i, 0)),
            scratch_shapes=[pltpu.VMEM((tile_m, H_pad), f32)],
        ),
        compiler_params=pltpu.CompilerParams(
            dimension_semantics=("parallel", "arbitrary"),
            vmem_limit_bytes=_vmem_limit(l1_bytes)),
    )(a, xw1, x_p, w1r_p, b1_p)

    # ---- Kernel 2: GraphConv2 + ReLU + per-row-tile pooled partials ----
    pool_parts = pl.pallas_call(
        _layer2_kernel,
        out_shape=jax.ShapeDtypeStruct((ni, G, H_pad), f32),
        grid_spec=pltpu.PrefetchScalarGridSpec(
            num_scalar_prefetch=0,
            grid=(ni, nk),
            in_specs=[
                pl.BlockSpec((tile_m, tile_k), lambda i, k: (i, k)),   # A
                pl.BlockSpec((tile_k, H_pad), lambda i, k: (k, 0)),    # h1 messages
                pl.BlockSpec((tile_m, H_pad), lambda i, k: (i, 0)),    # h1 root rows
                pl.BlockSpec((H_pad, H_pad), lambda i, k: (0, 0)),     # W2_root
                pl.BlockSpec((H_pad, H_pad), lambda i, k: (0, 0)),     # W2_rel
                pl.BlockSpec((1, H_pad), lambda i, k: (0, 0)),         # b2
                pl.BlockSpec((G, tile_m), lambda i, k: (0, i)),        # P cols of tile i
            ],
            out_specs=pl.BlockSpec((None, G, H_pad), lambda i, k: (i, 0, 0)),
            scratch_shapes=[pltpu.VMEM((tile_m, H_pad), f32)],
        ),
        compiler_params=pltpu.CompilerParams(
            dimension_semantics=("parallel", "arbitrary"),
            vmem_limit_bytes=_vmem_limit(l2_bytes)),
    )(a, h1, h1, w2r_p, w2n_p, b2_p, p)

    # ---- Kernel 3: sum partials + fc + sigmoid (tiny) ----
    out = pl.pallas_call(
        _head_kernel,
        out_shape=jax.ShapeDtypeStruct((G, C_pad), f32),
        grid_spec=pltpu.PrefetchScalarGridSpec(
            num_scalar_prefetch=0,
            grid=(1,),
            in_specs=[
                pl.BlockSpec((ni, G, H_pad), lambda i: (0, 0, 0)),
                pl.BlockSpec((H_pad, C_pad), lambda i: (0, 0)),
                pl.BlockSpec((1, C_pad), lambda i: (0, 0)),
            ],
            out_specs=pl.BlockSpec((G, C_pad), lambda i: (0, 0)),
        ),
        compiler_params=pltpu.CompilerParams(
            dimension_semantics=("arbitrary",)),
    )(pool_parts, wfc_p, bfc_p)

    return out[:, :C]


# --------------------------- reference & params ------------------------------


def gnn_reference(x, edge_index, batch, num_graphs, params):
    """Pure-JAX reference with identical semantics."""
    w1r, w1n, b1, w2r, w2n, b2, wfc, bfc = params
    N = x.shape[0]
    src, dst = edge_index[0], edge_index[1]
    A = jnp.zeros((N, N), jnp.float32).at[dst, src].add(1.0)
    h1 = jnp.maximum(x @ w1r + (A @ x) @ w1n + b1, 0.0)
    h2 = jnp.maximum(h1 @ w2r + (A @ h1) @ w2n + b2, 0.0)
    counts = jnp.maximum(
        jnp.zeros((num_graphs,), jnp.float32).at[batch].add(1.0), 1.0)
    pooled = jnp.zeros((num_graphs, h2.shape[1]), jnp.float32).at[batch].add(h2)
    pooled = pooled / counts[:, None]
    return jax.nn.sigmoid(pooled @ wfc + bfc)


def init_params(key, num_node_features, hidden_channels, num_classes):
    ks = jax.random.split(key, 8)
    s = 0.1
    w1r = s * jax.random.normal(ks[0], (num_node_features, hidden_channels), jnp.float32)
    w1n = s * jax.random.normal(ks[1], (num_node_features, hidden_channels), jnp.float32)
    b1 = s * jax.random.normal(ks[2], (1, hidden_channels), jnp.float32)
    w2r = s * jax.random.normal(ks[3], (hidden_channels, hidden_channels), jnp.float32)
    w2n = s * jax.random.normal(ks[4], (hidden_channels, hidden_channels), jnp.float32)
    b2 = s * jax.random.normal(ks[5], (1, hidden_channels), jnp.float32)
    wfc = s * jax.random.normal(ks[6], (hidden_channels, num_classes), jnp.float32)
    bfc = s * jax.random.normal(ks[7], (1, num_classes), jnp.float32)
    return (w1r, w1n, b1, w2r, w2n, b2, wfc, bfc)


# --------------------------- test harness ------------------------------------


if __name__ == "__main__":
    num_node_features = 4
    hidden_channels = 32
    num_classes = 4
    num_graphs = 2
    nodes_per_graph = 160          # N=320 -> N_pad=384
    N = num_graphs * nodes_per_graph

    key = jax.random.PRNGKey(0)
    k_x, k_p = jax.random.split(key)

    x = jax.random.normal(k_x, (N, num_node_features), jnp.float32)
    batch = jnp.repeat(jnp.arange(num_graphs, dtype=jnp.int32), nodes_per_graph)

    # Deterministic bidirectional ring within each graph.
    edges = []
    for g in range(num_graphs):
        base = g * nodes_per_graph
        for i in range(nodes_per_graph):
            u, v = base + i, base + (i + 1) % nodes_per_graph
            edges.append((u, v))
            edges.append((v, u))
    edge_index = jnp.array(edges, dtype=jnp.int32).T   # [2, E], row0=src, row1=dst

    params = init_params(k_p, num_node_features, hidden_channels, num_classes)

    ref = jax.block_until_ready(
        gnn_reference(x, edge_index, batch, num_graphs, params))

    # Default big-tile config: A is a single resident tile (1x1 grid).
    out = jax.block_until_ready(
        gnn_forward(x, edge_index, batch, num_graphs, params))
    # Small-tile config exercises the multi-tile accumulation / partial-pool
    # path (3x3 grid of 128-tiles).
    out_tiled = jax.block_until_ready(
        gnn_forward(x, edge_index, batch, num_graphs, params,
                    tile_m_cap=128, tile_k_cap=128))

    for o in (out, out_tiled):
        assert o.shape == (num_graphs, num_classes)
        assert bool(jnp.all(jnp.isfinite(o)))
        assert bool(jnp.all((o >= 0.0) & (o <= 1.0)))
        assert bool(jnp.allclose(o, ref, atol=1e-2, rtol=1e-2))
    print("KERNEL_OK")
</pallas_src>

<mosaic_0001>
module attributes {stable_mosaic.version = 11 : i64} {
  func.func @_layer1_kernel(%arg0: i32, %arg1: i32, %arg2: memref<384x384xbf16, #tpu.memory_space<vmem>>, %arg3: memref<384x128xbf16, #tpu.memory_space<vmem>>, %arg4: memref<384x4xf32, #tpu.memory_space<vmem>>, %arg5: memref<4x128xf32, #tpu.memory_space<vmem>>, %arg6: memref<1x128xf32, #tpu.memory_space<vmem>>, %arg7: memref<384x128xbf16, #tpu.memory_space<vmem>>, %arg8: memref<384x128xf32, #tpu.memory_space<vmem>>) attributes {dimension_semantics = [#tpu.dimension_semantics<parallel>, #tpu.dimension_semantics<arbitrary>], iteration_bounds = array<i64: 1, 1>, scalar_prefetch = 0 : i64, scratch_operands = 1 : i64, tpu.core_type = #tpu.core_type<tc>, window_params = [{transform_indices = @transform_0, window_bounds = array<i64: 384, 384>}, {transform_indices = @transform_1, window_bounds = array<i64: 384, 128>}, {transform_indices = @transform_2, window_bounds = array<i64: 384, 4>}, {pipeline_mode = #tpu.pipeline_mode<synchronous>, transform_indices = @transform_3, window_bounds = array<i64: 4, 128>}, {pipeline_mode = #tpu.pipeline_mode<synchronous>, transform_indices = @transform_4, window_bounds = array<i64: 1, 128>}, {transform_indices = @transform_5, window_bounds = array<i64: 384, 128>}]} {
    %c0_i32 = arith.constant 0 : i32
    %0 = arith.cmpi eq, %arg1, %c0_i32 : i32
    %1 = arith.extui %0 : i1 to i32
    %c0_i32_0 = arith.constant 0 : i32
    %2 = arith.cmpi ne, %1, %c0_i32_0 : i32
    scf.if %2 {
      %cst_10 = arith.constant 0.000000e+00 : f32
      %12 = vector.broadcast %cst_10 : f32 to vector<384x128xf32>
      %c0_11 = arith.constant 0 : index
      %c0_12 = arith.constant 0 : index
      %13 = vector.load %arg8[%c0_11, %c0_12] : memref<384x128xf32, #tpu.memory_space<vmem>>, vector<384x128xf32>
      tpu.vector_store %arg8[%c0_11, %c0_12], %12 {strides = array<i32>} : memref<384x128xf32, #tpu.memory_space<vmem>>, vector<384x128xf32>,
    } else {
    }
    %c0 = arith.constant 0 : index
    %c0_1 = arith.constant 0 : index
    %3 = vector.load %arg8[%c0, %c0_1] : memref<384x128xf32, #tpu.memory_space<vmem>>, vector<384x128xf32>
    %c0_2 = arith.constant 0 : index
    %c0_3 = arith.constant 0 : index
    %4 = vector.load %arg2[%c0_2, %c0_3] : memref<384x384xbf16, #tpu.memory_space<vmem>>, vector<384x384xbf16>
    %c0_4 = arith.constant 0 : index
    %c0_5 = arith.constant 0 : index
    %5 = vector.load %arg3[%c0_4, %c0_5] : memref<384x128xbf16, #tpu.memory_space<vmem>>, vector<384x128xbf16>
    %cst = arith.constant dense<0.000000e+00> : vector<384x128xf32>
    %6 = tpu.matmul %4, %5, %cst {dimension_numbers = #tpu.dot_dimension_numbers<[1], [0], [0], [1], [0, 0, 1, 1], [], []>} : vector<384x384xbf16>, vector<384x128xbf16>, vector<384x128xf32> -> vector<384x128xf32>
    %7 = arith.addf %3, %6 : vector<384x128xf32>
    %c0_6 = arith.constant 0 : index
    %c0_7 = arith.constant 0 : index
    %8 = vector.load %arg8[%c0_6, %c0_7] : memref<384x128xf32, #tpu.memory_space<vmem>>, vector<384x128xf32>
    tpu.vector_store %arg8[%c0_6, %c0_7], %7 {strides = array<i32>} : memref<384x128xf32, #tpu.memory_space<vmem>>, vector<384x128xf32>,
    %c0_i32_8 = arith.constant 0 : i32
    %9 = arith.cmpi eq, %arg1, %c0_i32_8 : i32
    %10 = arith.extui %9 : i1 to i32
    %c0_i32_9 = arith.constant 0 : i32
    %11 = arith.cmpi ne, %10, %c0_i32_9 : i32
    scf.if %11 {
      %c0_10 = arith.constant 0 : index
      %c0_11 = arith.constant 0 : index
      %12 = vector.load %arg4[%c0_10, %c0_11] : memref<384x4xf32, #tpu.memory_space<vmem>>, vector<384x4xf32>
      %c0_12 = arith.constant 0 : index
      %c0_13 = arith.constant 0 : index
      %13 = vector.load %arg5[%c0_12, %c0_13] : memref<4x128xf32, #tpu.memory_space<vmem>>, vector<4x128xf32>
      %cst_14 = arith.constant dense<0.000000e+00> : vector<384x128xf32>
      %14 = tpu.matmul %12, %13, %cst_14 {dimension_numbers = #tpu.dot_dimension_numbers<[1], [0], [0], [1], [0, 0, 1, 1], [], []>} : vector<384x4xf32>, vector<4x128xf32>, vector<384x128xf32> -> vector<384x128xf32>
      %c0_15 = arith.constant 0 : index
      %c0_16 = arith.constant 0 : index
      %15 = vector.load %arg8[%c0_15, %c0_16] : memref<384x128xf32, #tpu.memory_space<vmem>>, vector<384x128xf32>
      %16 = arith.addf %14, %15 : vector<384x128xf32>
      %c0_17 = arith.constant 0 : index
      %c0_18 = arith.constant 0 : index
      %17 = vector.load %arg6[%c0_17, %c0_18] : memref<1x128xf32, #tpu.memory_space<vmem>>, vector<1x128xf32>
      %18 = vector.broadcast %17 : vector<1x128xf32> to vector<384x128xf32>
      %19 = arith.addf %16, %18 : vector<384x128xf32>
      %cst_19 = arith.constant 0.000000e+00 : f32
      %20 = vector.broadcast %cst_19 : f32 to vector<384x128xf32>
      %21 = arith.maximumf %19, %20 : vector<384x128xf32>
      %22 = arith.truncf %21 : vector<384x128xf32> to vector<384x128xbf16>
      %c0_20 = arith.constant 0 : index
      %c0_21 = arith.constant 0 : index
      %23 = vector.load %arg7[%c0_20, %c0_21] : memref<384x128xbf16, #tpu.memory_space<vmem>>, vector<384x128xbf16>
      tpu.vector_store %arg7[%c0_20, %c0_21], %22 {strides = array<i32>} : memref<384x128xbf16, #tpu.memory_space<vmem>>, vector<384x128xbf16>,
    } else {
    }
    return
  }
  func.func @transform_0(%arg0: i32, %arg1: i32) -> (i32, i32) {
    %c0_i32 = arith.constant 0 : i32
    return %arg0, %arg1 : i32, i32
  }
  func.func @transform_1(%arg0: i32, %arg1: i32) -> (i32, i32) {
    %c0_i32 = arith.constant 0 : i32
    %c0_i32_0 = arith.constant 0 : i32
    return %arg1, %c0_i32 : i32, i32
  }
  func.func @transform_2(%arg0: i32, %arg1: i32) -> (i32, i32) {
    %c0_i32 = arith.constant 0 : i32
    %c0_i32_0 = arith.constant 0 : i32
    return %arg0, %c0_i32 : i32, i32
  }
  func.func @transform_3(%arg0: i32, %arg1: i32) -> (i32, i32) {
    %c0_i32 = arith.constant 0 : i32
    %c0_i32_0 = arith.constant 0 : i32
    %c0_i32_1 = arith.constant 0 : i32
    return %c0_i32, %c0_i32_0 : i32, i32
  }
  func.func @transform_4(%arg0: i32, %arg1: i32) -> (i32, i32) {
    %c0_i32 = arith.constant 0 : i32
    %c0_i32_0 = arith.constant 0 : i32
    %c0_i32_1 = arith.constant 0 : i32
    return %c0_i32, %c0_i32_0 : i32, i32
  }
  func.func @transform_5(%arg0: i32, %arg1: i32) -> (i32, i32) {
    %c0_i32 = arith.constant 0 : i32
    %c0_i32_0 = arith.constant 0 : i32
    return %arg0, %c0_i32 : i32, i32
  }
}

</mosaic_0001>

<bundles_post_ra>
// kernel: tpu_custom_call.1
= control target key start
LH: loop header
LB: loop body
LE: loop exit
PB: predicated region body
PF: predicated region fallthrough
CT: control target
= control target key end

     0   :  { %10 = vsyncpa [#allocation4], 0  ;;  %s3052_s0 = inlined_call_operand.hbm [shape: bf16[384,384], index: 0, kind: input, shape index: {}]   ;;  %s3053_s1 = inlined_call_operand.vmem [shape: bf16[384,128], index: 1, kind: input, shape index: {}]   ;;  %s3054_s2 = inlined_call_operand.vmem [shape: f32[384,4], index: 2, kind: input, shape index: {}]   ;;  %s3055_s3 = inlined_call_operand.vmem [shape: f32[4,128], index: 3, kind: input, shape index: {}]   ;;  %s3056_s4 = inlined_call_operand.vmem [shape: f32[1,128], index: 4, kind: input, shape index: {}]   ;;  %s3057_s5 = inlined_call_operand.hbm [shape: bf16[384,128], index: 5, kind: output, shape index: {}]  }
   0x1   :  { %11 = vsyncpa [#allocation5], 0  ;;  %s16_s20 = sshll.u32 %s3052_s0, 4  ;;  %s2649_s21 = smov [#allocation3]   ;;  %s17_s20 = int_to_ptr.hbm [resolvable:$true] %s16_s20 }
   0x2   :  { %s18_s22 = sshll.u32 %s2649_s21, 4  ;;  %s2650_s23 = smov 192   ;;  %s19_s22 = int_to_ptr.vmem [resolvable:$true] %s18_s22 }
   0x3   :  { %s2651_s24 = smov 12  }
   0x4   :  { %24 = dma.hbm_to_vmem [thread:$0]  %s17_s20, 9216, %s19_s22, [#allocation4], %s2650_s23, %s2650_s23, %s2651_s24  }
   0x5   :  { %2645 = dma.done.wait [#allocation4], 9216  }
   0x6   :  { %2646 = vsyncadd [#allocation4], 4294958080  ;;  %v2429_v0 = vld [vmem:[%s3053_s1 + $0x38] sm:$0xff]  ;;  %v2428_v3 = vld [vmem:[%s3053_s1 + $0x30] sm:$0xff]  ;;  %vm1537_vm0 = vcmask 1043456   ;;  %vm1392_vm1 = vcmask 31744  }
   0x7   :  { %v2437_v1 = vld [vmem:[%s3053_s1 + $0x78] sm:$0xff]  ;;  %809 = vmatpush.bf16.msra.mxu0 %v2429_v0  ;;  %v2436_v4 = vld [vmem:[%s3053_s1 + $0x70] sm:$0xff]  ;;  %v2427_v6 = vld [vmem:[%s3053_s1 + $0x28] sm:$0xff]  ;;  %s1904_s12 = sshll.u32 %s3057_s5, 4  ;;  %s2653_s13 = smov 64   ;;  %s1905_s12 = int_to_ptr.hbm [resolvable:$true] %s1904_s12 }
   0x8   :  { %v2445_v2 = vld [vmem:[%s3053_s1 + $0xb8] sm:$0xff]  ;;  %938 = vmatpush.bf16.msra.mxu1 %v2437_v1  ;;  %v2444_v5 = vld [vmem:[%s3053_s1 + $0xb0] sm:$0xff]  ;;  %v2435_v7 = vld [vmem:[%s3053_s1 + $0x68] sm:$0xff]  ;;  %s2654_s14 = smov 4  }
   0x9   :  { %1067 = vmatpush.bf16.msra.mxu2 %v2445_v2  ;;  %v2443_v8 = vld [vmem:[%s3053_s1 + $0xa8] sm:$0xff]  ;;  %v2426_v9 = vld [vmem:[%s3053_s1 + $0x20] sm:$0xff]  ;;  %v2425_v14 = vld [vmem:[%s3053_s1 + $0x18] sm:$0xff] }
   0xa   :  { %v2434_v10 = vld [vmem:[%s3053_s1 + $0x60] sm:$0xff]  ;;  %v2433_v15 = vld [vmem:[%s3053_s1 + $0x58] sm:$0xff]  ;;  %v1296_v17 = vld [vmem:[%s3054_s2 + $0x8] sm:$0xff] }
   0xb   :  { %810 = vmatpush.bf16.msra.mxu0 %v2428_v3  ;;  %v1343_v11 = vld [vmem:[%s3055_s3] sm:$0xf]  ;;  %v2441_v16 = vld [vmem:[%s3053_s1 + $0x98] sm:$0xff]  ;;  %v2424_v18 = vld [vmem:[%s3053_s1 + $0x10] sm:$0xff] }
   0xc   :  { %939 = vmatpush.bf16.msra.mxu1 %v2436_v4  ;;  %v1295_v12 = vld [vmem:[%s3054_s2] sm:$0xff]  ;;  %2301 = vmatpush.msk.msra.mxu3 %vm1537_vm0, %v1343_v11  ;;  %v2432_v19 = vld [vmem:[%s3053_s1 + $0x50] sm:$0xff]  ;;  %v2423_v21 = vld [vmem:[%s3053_s1 + $0x8] sm:$0xff] }
   0xd   :  { %1068 = vmatpush.bf16.msra.mxu2 %v2444_v5  ;;  %v2442_v13 = vld [vmem:[%s3053_s1 + $0xa0] sm:$0xff]  ;;  %2302 = vmatmul.msk.f32.vlgmr.msra.gmra.mxu3 %vm1392_vm1, %v1295_v12  ;;  %v2440_v20 = vld [vmem:[%s3053_s1 + $0x90] sm:$0xff]  ;;  %v2431_v22 = vld [vmem:[%s3053_s1 + $0x48] sm:$0xff] }
   0xe   :  { %v2439_v23 = vld [vmem:[%s3053_s1 + $0x88] sm:$0xff]  ;;  %v2422_v24 = vld [vmem:[%s3053_s1] sm:$0xff]  ;;  %v1297_v27 = vld [vmem:[%s3054_s2 + $0x10] sm:$0xff] }
   0xf   :  { %811 = vmatpush.bf16.msra.mxu0 %v2427_v6  ;;  %v2430_v25 = vld [vmem:[%s3053_s1 + $0x40] sm:$0xff]  ;;  %v2351_v28 = vld [vmem:[#allocation3 + $0x8] sm:$0xf0]  ;;  %v1921_v30 = vld [vmem:[#allocation3 + $0xc] sm:$0xf0] }
  0x10   :  { %940 = vmatpush.bf16.msra.mxu1 %v2435_v7  ;;  %v1919_v26 = vld [vmem:[#allocation3] sm:$0xf]  ;;  %v2350_v29 = vld [vmem:[#allocation3 + $0x4] sm:$0xf]  ;;  %v1927_v32 = vld [vmem:[#allocation3 + $0x8] sm:$0xf] }
  0x11   :  { %1069 = vmatpush.bf16.msra.mxu2 %v2443_v8  ;;  %v2438_v31 = vld [vmem:[%s3053_s1 + $0x80] sm:$0xff]  ;;  %v2352_v33 = vld [vmem:[#allocation3 + $0x10] sm:$0xf0]  ;;  %v1920_v34 = vor.u32 %v2351_v28, %v1919_v26  ;;  %v1924_v35 = vor.u32 %v2350_v29, %v1921_v30  ;;  %v1298_v37 = vld [vmem:[%s3054_s2 + $0x18] sm:$0xff] }
  0x12   :  { %v1928_v36 = vor.u32 %v2352_v33, %v1927_v32  ;;  %v1931_v38 = vld [vmem:[#allocation3 + $0x18] sm:$0xf]  ;;  %v1299_v39 = vld [vmem:[%s3054_s2 + $0x20] sm:$0xff]  ;;  %v2353_v41 = vld [vmem:[#allocation3 + $0x1c] sm:$0xf] }
  0x13   :  { %812 = vmatpush.bf16.msra.mxu0 %v2426_v9  ;;  %v2354_v40 = vld [vmem:[#allocation3 + $0x20] sm:$0xf0]  ;;  %v1933_v42 = vld [vmem:[#allocation3 + $0x24] sm:$0xf0]  ;;  %v1939_v43 = vld [vmem:[#allocation3 + $0x20] sm:$0xf] }
  0x14   :  { %941 = vmatpush.bf16.msra.mxu1 %v2434_v10  ;;  %v2355_v44 = vld [vmem:[#allocation3 + $0x28] sm:$0xf0]  ;;  %v1932_v45 = vor.u32 %v2354_v40, %v1931_v38  ;;  %v1936_v46 = vor.u32 %v2353_v41, %v1933_v42  ;;  %v1943_v49 = vld [vmem:[#allocation3 + $0x30] sm:$0xf]  ;;  %v2357_v51 = vld [vmem:[#allocation3 + $0x38] sm:$0xf0] }
  0x15   :  { %1070 = vmatpush.bf16.msra.mxu2 %v2442_v13  ;;  %2303 = vmatmul.msk.f32.gmra.mxu3 %vm1392_vm1, %v1296_v17  ;;  %v1940_v47 = vor.u32 %v2355_v44, %v1939_v43  ;;  %v1300_v48 = vld [vmem:[%s3054_s2 + $0x28] sm:$0xff]  ;;  %v1301_v50 = vld [vmem:[%s3054_s2 + $0x30] sm:$0xff]  ;;  %v1945_v53 = vld [vmem:[#allocation3 + $0x3c] sm:$0xf0]  ;;  %v1944_v56 = vor.u32 %v2357_v51, %v1943_v49 }
  0x16   :  { %v2356_v52 = vld [vmem:[#allocation3 + $0x34] sm:$0xf]  ;;  %v1951_v54 = vld [vmem:[#allocation3 + $0x38] sm:$0xf]  ;;  %v2358_v55 = vld [vmem:[#allocation3 + $0x40] sm:$0xf0] }
  0x17   :  { %813 = vmatpush.bf16.msra.mxu0 %v2425_v14  ;;  %v1948_v57 = vor.u32 %v2356_v52, %v1945_v53  ;;  %v1952_v58 = vor.u32 %v2358_v55, %v1951_v54  ;;  %v1302_v59 = vld [vmem:[%s3054_s2 + $0x38] sm:$0xff]  ;;  %v1955_v60 = vld [vmem:[#allocation3 + $0x48] sm:$0xf]  ;;  %v1303_v61 = vld [vmem:[%s3054_s2 + $0x40] sm:$0xff] }
  0x18   :  { %942 = vmatpush.bf16.msra.mxu1 %v2433_v15  ;;  %v2360_v62 = vld [vmem:[#allocation3 + $0x50] sm:$0xf0]  ;;  %v2359_v63 = vld [vmem:[#allocation3 + $0x4c] sm:$0xf]  ;;  %v1957_v0 = vld [vmem:[#allocation3 + $0x54] sm:$0xf0] }
  0x19   :  { %1071 = vmatpush.bf16.msra.mxu2 %v2441_v16  ;;  %v1963_v1 = vld [vmem:[#allocation3 + $0x50] sm:$0xf]  ;;  %v2361_v2 = vld [vmem:[#allocation3 + $0x58] sm:$0xf0]  ;;  %v1956_v3 = vor.u32 %v2360_v62, %v1955_v60  ;;  %v1960_v4 = vor.u32 %v2359_v63, %v1957_v0  ;;  %v1304_v6 = vld [vmem:[%s3054_s2 + $0x48] sm:$0xff] }
  0x1a   :  { %v1964_v5 = vor.u32 %v2361_v2, %v1963_v1  ;;  %v1967_v7 = vld [vmem:[#allocation3 + $0x60] sm:$0xf]  ;;  %v1305_v8 = vld [vmem:[%s3054_s2 + $0x50] sm:$0xff]  ;;  %v2363_v9 = vld [vmem:[#allocation3 + $0x68] sm:$0xf0] }
  0x1b   :  { %814 = vmatpush.bf16.msra.mxu0 %v2424_v18  ;;  %v2362_v10 = vld [vmem:[#allocation3 + $0x64] sm:$0xf]  ;;  %v1969_v11 = vld [vmem:[#allocation3 + $0x6c] sm:$0xf0]  ;;  %v1975_v12 = vld [vmem:[#allocation3 + $0x68] sm:$0xf]  ;;  %v1968_v14 = vor.u32 %v2363_v9, %v1967_v7 }
  0x1c   :  { %943 = vmatpush.bf16.msra.mxu1 %v2432_v19  ;;  %v2364_v13 = vld [vmem:[#allocation3 + $0x70] sm:$0xf0]  ;;  %v1972_v15 = vor.u32 %v2362_v10, %v1969_v11  ;;  %v1306_v17 = vld [vmem:[%s3054_s2 + $0x58] sm:$0xff]  ;;  %v1307_v19 = vld [vmem:[%s3054_s2 + $0x60] sm:$0xff] }
  0x1d   :  { %1072 = vmatpush.bf16.msra.mxu2 %v2440_v20  ;;  %2304 = vmatmul.msk.f32.gmra.mxu3 %vm1392_vm1, %v1297_v27  ;;  %v1976_v16 = vor.u32 %v2364_v13, %v1975_v12  ;;  %v1979_v18 = vld [vmem:[#allocation3 + $0x78] sm:$0xf]  ;;  %v2366_v20 = vld [vmem:[#allocation3 + $0x80] sm:$0xf0]  ;;  %v1308_v28 = vld [vmem:[%s3054_s2 + $0x68] sm:$0xff] }
  0x1e   :  { %v1991_v29 = vld [vmem:[#allocation3 + $0x90] sm:$0xf]  ;;  %v2368_v32 = vld [vmem:[#allocation3 + $0x94] sm:$0xf]  ;;  %v1993_v33 = vld [vmem:[#allocation3 + $0x9c] sm:$0xf0] }
  0x1f   :  { %815 = vmatpush.bf16.msra.mxu0 %v2423_v21  ;;  %v2365_v21 = vld [vmem:[#allocation3 + $0x7c] sm:$0xf]  ;;  %v1309_v30 = vld [vmem:[%s3054_s2 + $0x70] sm:$0xff]  ;;  %v2003_v40 = vld [vmem:[#allocation3 + $0xa8] sm:$0xf] }
  0x20   :  { %944 = vmatpush.bf16.msra.mxu1 %v2431_v22  ;;  %v1981_v22 = vld [vmem:[#allocation3 + $0x84] sm:$0xf0]  ;;  %v1311_v41 = vld [vmem:[%s3054_s2 + $0x80] sm:$0xff]  ;;  %v2372_v42 = vld [vmem:[#allocation3 + $0xb0] sm:$0xf0] }
  0x21   :  { %1073 = vmatpush.bf16.msra.mxu2 %v2439_v23  ;;  %v1987_v23 = vld [vmem:[#allocation3 + $0x80] sm:$0xf]  ;;  %v1984_v26 = vor.u32 %v2365_v21, %v1981_v22  ;;  %v2371_v43 = vld [vmem:[#allocation3 + $0xac] sm:$0xf]  ;;  %v2005_v44 = vld [vmem:[#allocation3 + $0xb4] sm:$0xf0] }
  0x22   :  { %v1312_v51 = vld [vmem:[%s3054_s2 + $0x88] sm:$0xff]  ;;  %v2015_v53 = vld [vmem:[#allocation3 + $0xc0] sm:$0xf]  ;;  %v1313_v54 = vld [vmem:[%s3054_s2 + $0x90] sm:$0xff] }
  0x23   :  { %816 = vmatpush.bf16.msra.mxu0 %v2422_v24  ;;  %v2367_v24 = vld [vmem:[#allocation3 + $0x88] sm:$0xf0]  ;;  %v1314_v2 = vld [vmem:[%s3054_s2 + $0x98] sm:$0xff]  ;;  %v1315_v10 = vld [vmem:[%s3054_s2 + $0xa0] sm:$0xff] }
  0x24   :  { %945 = vmatpush.bf16.msra.mxu1 %v2430_v25  ;;  %v1980_v25 = vor.u32 %v2366_v20, %v1979_v18  ;;  %v1988_v27 = vor.u32 %v2367_v24, %v1987_v23  ;;  %v2375_v55 = vld [vmem:[#allocation3 + $0xc8] sm:$0xf0]  ;;  %v2027_v9 = vld [vmem:[#allocation3 + $0xd8] sm:$0xf]  ;;  %v2378_v11 = vld [vmem:[#allocation3 + $0xe0] sm:$0xf0] }
  0x25   :  { %1074 = vmatpush.bf16.msra.mxu2 %v2438_v31  ;;  %2305 = vmatmul.msk.f32.gmra.mxu3 %vm1392_vm1, %v1298_v37  ;;  %v2369_v31 = vld [vmem:[#allocation3 + $0x98] sm:$0xf0]  ;;  %v1996_v37 = vor.u32 %v2368_v32, %v1993_v33  ;;  %v2016_v60 = vor.u32 %v2375_v55, %v2015_v53  ;;  %v2029_v13 = vld [vmem:[#allocation3 + $0xe4] sm:$0xf0]  ;;  %v2849_v18 = vld [vmem:[%s3056_s4] ss:$0 sm:$0xff]  ;;  %v2028_v20 = vor.u32 %v2378_v11, %v2027_v9 }
  0x26   :  { %817 = vmatmul.bf16.vlgmr.msra.gmra.mxu0 %v1920_v34  ;;  %v1999_v34 = vld [vmem:[#allocation3 + $0x98] sm:$0xf]  ;;  %v2377_v12 = vld [vmem:[#allocation3 + $0xdc] sm:$0xf]  ;;  %v2383_v9 = vld [vmem:[#allocation3 + $0x10c] sm:$0xf] }
  0x27   :  { %946 = vmatmul.bf16.vlgmr.msra.gmra.mxu1 %v1924_v35  ;;  %v2370_v35 = vld [vmem:[#allocation3 + $0xa0] sm:$0xf0]  ;;  %v2032_v21 = vor.u32 %v2377_v12, %v2029_v13  ;;  %v2059_v11 = vld [vmem:[#allocation3 + $0x110] sm:$0xf]  ;;  %v2385_v12 = vld [vmem:[#allocation3 + $0x118] sm:$0xf0] }
  0x28   :  { %1075 = vmatmul.bf16.vlgmr.msra.gmra.mxu2 %v1928_v36  ;;  %v1992_v36 = vor.u32 %v2369_v31, %v1991_v29  ;;  %v2000_v38 = vor.u32 %v2370_v35, %v1999_v34  ;;  %v1316_v29 = vld [vmem:[%s3054_s2 + $0xa8] sm:$0xff] }
  0x2d   :  { %2306 = vmatmul.msk.f32.gmra.mxu3 %vm1392_vm1, %v1299_v39  ;;  %v1310_v39 = vld [vmem:[%s3054_s2 + $0x78] sm:$0xff] }
  0x35   :  { %2307 = vmatmul.msk.f32.gmra.mxu3 %vm1392_vm1, %v1300_v48  ;;  %v2008_v48 = vor.u32 %v2371_v43, %v2005_v44  ;;  %v2380_v43 = vld [vmem:[#allocation3 + $0xf4] sm:$0xf]  ;;  %v2041_v44 = vld [vmem:[#allocation3 + $0xfc] sm:$0xf0] }
  0x36   :  { %822 = vmatmul.bf16.gmra.mxu0 %v1932_v45  ;;  %v2011_v45 = vld [vmem:[#allocation3 + $0xb0] sm:$0xf] }
  0x37   :  { %951 = vmatmul.bf16.gmra.mxu1 %v1936_v46  ;;  %v2373_v46 = vld [vmem:[#allocation3 + $0xb8] sm:$0xf0] }
  0x38   :  { %1080 = vmatmul.bf16.gmra.mxu2 %v1940_v47  ;;  %v2004_v47 = vor.u32 %v2372_v42, %v2003_v40  ;;  %v2012_v49 = vor.u32 %v2373_v46, %v2011_v45  ;;  %v2039_v40 = vld [vmem:[#allocation3 + $0xf0] sm:$0xf]  ;;  %v2381_v42 = vld [vmem:[#allocation3 + $0xf8] sm:$0xf0]  ;;  %v2047_v45 = vld [vmem:[#allocation3 + $0xf8] sm:$0xf] }
  0x39   :  { %v2382_v46 = vld [vmem:[#allocation3 + $0x100] sm:$0xf0] }
  0x3a   :  { %v2048_v55 = vor.u32 %v2382_v46, %v2047_v45 }
  0x3d   :  { %2308 = vmatmul.msk.f32.gmra.mxu3 %vm1392_vm1, %v1301_v50 }
  0x45   :  { %2309 = vmatmul.msk.f32.gmra.mxu3 %vm1392_vm1, %v1302_v59  ;;  %v2376_v59 = vld [vmem:[#allocation3 + $0xd0] sm:$0xf0] }
  0x46   :  { %827 = vmatmul.bf16.gmra.mxu0 %v1944_v56  ;;  %v2374_v56 = vld [vmem:[#allocation3 + $0xc4] sm:$0xf] }
  0x47   :  { %956 = vmatmul.bf16.gmra.mxu1 %v1948_v57  ;;  %v2017_v57 = vld [vmem:[#allocation3 + $0xcc] sm:$0xf0] }
  0x48   :  { %1085 = vmatmul.bf16.gmra.mxu2 %v1952_v58  ;;  %v2023_v58 = vld [vmem:[#allocation3 + $0xc8] sm:$0xf] }
  0x49   :  { %v2024_v0 = vor.u32 %v2376_v59, %v2023_v58  ;;  %v1318_v59 = vld [vmem:[%s3054_s2 + $0xb8] sm:$0xff] }
  0x4d   :  { %2310 = vmatmul.msk.f32.gmra.mxu3 %vm1392_vm1, %v1303_v61  ;;  %v2020_v61 = vor.u32 %v2374_v56, %v2017_v57 }
  0x55   :  { %2311 = vmatmul.msk.f32.gmra.mxu3 %vm1392_vm1, %v1304_v6 }
  0x56   :  { %832 = vmatmul.bf16.gmra.mxu0 %v1956_v3 }
  0x57   :  { %961 = vmatmul.bf16.gmra.mxu1 %v1960_v4 }
  0x58   :  { %1090 = vmatmul.bf16.gmra.mxu2 %v1964_v5 }
  0x5d   :  { %2312 = vmatmul.msk.f32.gmra.mxu3 %vm1392_vm1, %v1305_v8 }
  0x65   :  { %2313 = vmatmul.msk.f32.gmra.mxu3 %vm1392_vm1, %v1306_v17 }
  0x66   :  { %837 = vmatmul.bf16.gmra.mxu0 %v1968_v14  ;;  %v2035_v14 = vld [vmem:[#allocation3 + $0xe0] sm:$0xf] }
  0x67   :  { %966 = vmatmul.bf16.gmra.mxu1 %v1972_v15  ;;  %v2379_v15 = vld [vmem:[#allocation3 + $0xe8] sm:$0xf0] }
  0x68   :  { %1095 = vmatmul.bf16.gmra.mxu2 %v1976_v16 }
  0x6d   :  { %2314 = vmatmul.msk.f32.gmra.mxu3 %vm1392_vm1, %v1307_v19 }
  0x75   :  { %2315 = vmatmul.msk.f32.gmra.mxu3 %vm1392_vm1, %v1308_v28 }
  0x76   :  { %842 = vmatmul.bf16.gmra.mxu0 %v1980_v25  ;;  %v2036_v25 = vor.u32 %v2379_v15, %v2035_v14 }
  0x77   :  { %971 = vmatmul.bf16.gmra.mxu1 %v1984_v26 }
  0x78   :  { %1100 = vmatmul.bf16.gmra.mxu2 %v1988_v27 }
  0x7d   :  { %2316 = vmatmul.msk.f32.gmra.mxu3 %vm1392_vm1, %v1309_v30 }
  0x85   :  { %2317 = vmatmul.msk.f32.gmra.mxu3 %vm1392_vm1, %v1310_v39 }
  0x86   :  { %847 = vmatmul.bf16.gmra.mxu0 %v1992_v36 }
  0x87   :  { %976 = vmatmul.bf16.gmra.mxu1 %v1996_v37 }
  0x88   :  { %1105 = vmatmul.bf16.gmra.mxu2 %v2000_v38 }
  0x8d   :  { %2318 = vmatmul.msk.f32.gmra.mxu3 %vm1392_vm1, %v1311_v41  ;;  %v1317_v41 = vld [vmem:[%s3054_s2 + $0xb0] sm:$0xff] }
  0x90   :  { %v1558_v50 = vpop.f32.mrf.mxu3 }
  0x95   :  { %2319 = vmatmul.msk.f32.gmra.mxu3 %vm1392_vm1, %v1312_v51  ;;  %v2044_v51 = vor.u32 %v2380_v43, %v2041_v44  ;;  %v2388_v43 = vld [vmem:[#allocation3 + $0x130] sm:$0xf0] }
  0x96   :  { %852 = vmatmul.bf16.gmra.mxu0 %v2004_v47 }
  0x97   :  { %981 = vmatmul.bf16.gmra.mxu1 %v2008_v48 }
  0x98   :  { %1110 = vmatmul.bf16.gmra.mxu2 %v2012_v49  ;;  %v1561_v52 = vpop.f32.mrf.mxu3 }
  0x9d   :  { %2320 = vmatmul.msk.f32.gmra.mxu3 %vm1392_vm1, %v1313_v54 }
  0xa0   :  { %v1564_v1 = vpop.f32.mrf.mxu3 }
  0xa3   :  { %v818_v62 = vpop.f32.mrf.mxu0 }
  0xa4   :  { %v947_v63 = vpop.f32.mrf.mxu1 }
  0xa5   :  { %v948_v3 = vadd.f32 %v947_v63, %v818_v62  ;;  %2321 = vmatmul.msk.f32.gmra.mxu3 %vm1392_vm1, %v1314_v2 }
  0xa6   :  { %857 = vmatmul.bf16.gmra.mxu0 %v2016_v60 }
  0xa7   :  { %986 = vmatmul.bf16.gmra.mxu1 %v2020_v61 }
  0xa8   :  { %1115 = vmatmul.bf16.gmra.mxu2 %v2024_v0  ;;  %v1567_v7 = vpop.f32.mrf.mxu3 }
  0xab   :  { %v1076_v4 = vpop.f32.mrf.mxu2  ;;  %v820_v5 = vpop.f32.mrf.mxu0 }
  0xac   :  { %v949_v6 = vpop.f32.mrf.mxu1  ;;  %v1077_v8 = vadd.f32 %v1076_v4, %v948_v3 }
  0xad   :  { %v950_v16 = vadd.f32 %v949_v6, %v820_v5  ;;  %2322 = vmatmul.msk.f32.gmra.mxu3 %vm1392_vm1, %v1315_v10  ;;  %v2051_v6 = vld [vmem:[#allocation3 + $0x108] sm:$0xf]  ;;  %v2053_v10 = vld [vmem:[#allocation3 + $0x114] sm:$0xf0] }
  0xae   :  { %v1559_v17 = vadd.f32 %v1558_v50, %v1077_v8  ;;  %v2040_v50 = vor.u32 %v2381_v42, %v2039_v40  ;;  %v2384_v8 = vld [vmem:[#allocation3 + $0x110] sm:$0xf0]  ;;  %v2386_v40 = vld [vmem:[#allocation3 + $0x124] sm:$0xf]  ;;  %v2071_v42 = vld [vmem:[#allocation3 + $0x128] sm:$0xf] }
  0xb0   :  { %v2852_v26 = vpop.f32.mrf.mxu3  ;;  %v1706_v27 = vadd.f32 %v2849_v18, %v1559_v17  ;;  %v2056_v17 = vor.u32 %v2383_v9, %v2053_v10  ;;  %v2391_v9 = vld [vmem:[#allocation3 + $0x148] sm:$0xf0] }
  0xb2   :  { %v1754_v31 = vmax.f32 %v1706_v27, 0.0 }
  0xb3   :  { %v1078_v19 = vpop.f32.mrf.mxu2  ;;  %v823_v23 = vpop.f32.mrf.mxu0 }
  0xb4   :  { %v1079_v22 = vadd.f32 %v1078_v19, %v950_v16  ;;  %v952_v24 = vpop.f32.mrf.mxu1  ;;  %v2052_v16 = vor.u32 %v2384_v8, %v2051_v6  ;;  %v2389_v6 = vld [vmem:[#allocation3 + $0x13c] sm:$0xf]  ;;  %v2083_v8 = vld [vmem:[#allocation3 + $0x140] sm:$0xf] }
  0xb5   :  { %v953_v32 = vadd.f32 %v952_v24, %v823_v23  ;;  %2323 = vmatmul.msk.f32.gmra.mxu3 %vm1392_vm1, %v1316_v29 }
  0xb6   :  { %v1562_v28 = vadd.f32 %v1561_v52, %v1079_v22  ;;  %862 = vmatmul.bf16.gmra.mxu0 %v2028_v20  ;;  %v2060_v22 = vor.u32 %v2385_v12, %v2059_v11 }
  0xb7   :  { %991 = vmatmul.bf16.gmra.mxu1 %v2032_v21 }
  0xb8   :  { %v1707_v30 = vadd.f32 %v2849_v18, %v1562_v28  ;;  %1120 = vmatmul.bf16.gmra.mxu2 %v2036_v25  ;;  %v1573_v38 = vpop.f32.mrf.mxu3 }
  0xba   :  { %v1755_v33 = vmax.f32 %v1707_v30, 0.0 }
  0xbb   :  { %v1081_v34 = vpop.f32.mrf.mxu2  ;;  %v825_v36 = vpop.f32.mrf.mxu0 }
  0xbc   :  { %v2449_v35 = vpack.c.bf16 %v1755_v33, %v1754_v31  ;;  %v954_v37 = vpop.f32.mrf.mxu1  ;;  %v1082_v39 = vadd.f32 %v1081_v34, %v953_v32 }
  0xbd   :  { %v955_v47 = vadd.f32 %v954_v37, %v825_v36  ;;  %2324 = vmatmul.msk.f32.gmra.mxu3 %vm1392_vm1, %v1317_v41  ;;  %v2063_v37 = vld [vmem:[#allocation3 + $0x120] sm:$0xf]  ;;  %v2065_v41 = vld [vmem:[#allocation3 + $0x12c] sm:$0xf0] }
  0xbe   :  { %2450 = vst [vmem:[#allocation6] sm:$0xff] %v2449_v35   ;;  %v1565_v48 = vadd.f32 %v1564_v1, %v1082_v39  ;;  %v2387_v39 = vld [vmem:[#allocation3 + $0x128] sm:$0xf0] }
  0xc0   :  { %v2864_v56 = vpop.f32.mrf.mxu3  ;;  %v1708_v57 = vadd.f32 %v2849_v18, %v1565_v48  ;;  %v2068_v48 = vor.u32 %v2386_v40, %v2065_v41  ;;  %v2394_v40 = vld [vmem:[#allocation3 + $0x160] sm:$0xf0] }
  0xc2   :  { %v1756_v61 = vmax.f32 %v1708_v57, 0.0 }
  0xc3   :  { %v1083_v49 = vpop.f32.mrf.mxu2  ;;  %v828_v53 = vpop.f32.mrf.mxu0 }
  0xc4   :  { %v1084_v52 = vadd.f32 %v1083_v49, %v955_v47  ;;  %v957_v54 = vpop.f32.mrf.mxu1  ;;  %v2064_v47 = vor.u32 %v2387_v39, %v2063_v37  ;;  %v2392_v37 = vld [vmem:[#allocation3 + $0x154] sm:$0xf]  ;;  %v2095_v39 = vld [vmem:[#allocation3 + $0x158] sm:$0xf] }
  0xc5   :  { %v958_v62 = vadd.f32 %v957_v54, %v828_v53  ;;  %2325 = vmatmul.msk.f32.gmra.mxu3 %vm1392_vm1, %v1318_v59 }
  0xc6   :  { %v1568_v58 = vadd.f32 %v1567_v7, %v1084_v52  ;;  %867 = vmatmul.bf16.gmra.mxu0 %v2040_v50  ;;  %v1319_v7 = vld [vmem:[%s3054_s2 + $0xc0] sm:$0xff]  ;;  %v2072_v52 = vor.u32 %v2388_v43, %v2071_v42 }
  0xc7   :  { %996 = vmatmul.bf16.gmra.mxu1 %v2044_v51 }
  0xc8   :  { %v1709_v60 = vadd.f32 %v2849_v18, %v1568_v58  ;;  %1125 = vmatmul.bf16.gmra.mxu2 %v2048_v55  ;;  %v1579_v4 = vpop.f32.mrf.mxu3 }
  0xca   :  { %v1757_v63 = vmax.f32 %v1709_v60, 0.0 }
  0xcb   :  { %v1086_v0 = vpop.f32.mrf.mxu2  ;;  %v830_v2 = vpop.f32.mrf.mxu0 }
  0xcc   :  { %v2454_v1 = vpack.c.bf16 %v1757_v63, %v1756_v61  ;;  %v959_v3 = vpop.f32.mrf.mxu1  ;;  %v1087_v5 = vadd.f32 %v1086_v0, %v958_v62 }
  0xcd   :  { %v960_v13 = vadd.f32 %v959_v3, %v830_v2  ;;  %2326 = vmatmul.msk.f32.gmra.mxu3 %vm1392_vm1, %v1319_v7  ;;  %v2075_v3 = vld [vmem:[#allocation3 + $0x138] sm:$0xf]  ;;  %v2077_v7 = vld [vmem:[#allocation3 + $0x144] sm:$0xf0] }
  0xce   :  { %2566 = vst [vmem:[#allocation6 + $0x8] sm:$0xff] %v2454_v1   ;;  %v1571_v14 = vadd.f32 %v2852_v26, %v1087_v5  ;;  %v1320_v26 = vld [vmem:[%s3054_s2 + $0xc8] sm:$0xff]  ;;  %v2390_v5 = vld [vmem:[#allocation3 + $0x140] sm:$0xf0] }
  0xd0   :  { %v2877_v23 = vpop.f32.mrf.mxu3  ;;  %v1710_v24 = vadd.f32 %v2849_v18, %v1571_v14  ;;  %v2080_v14 = vor.u32 %v2389_v6, %v2077_v7  ;;  %v2397_v6 = vld [vmem:[#allocation3 + $0x178] sm:$0xf0] }
  0xd2   :  { %v1758_v28 = vmax.f32 %v1710_v24, 0.0 }
  0xd3   :  { %v1088_v15 = vpop.f32.mrf.mxu2  ;;  %v833_v20 = vpop.f32.mrf.mxu0 }
  0xd4   :  { %v1089_v19 = vadd.f32 %v1088_v15, %v960_v13  ;;  %v962_v21 = vpop.f32.mrf.mxu1  ;;  %v2076_v13 = vor.u32 %v2390_v5, %v2075_v3  ;;  %v2395_v3 = vld [vmem:[#allocation3 + $0x16c] sm:$0xf]  ;;  %v2107_v5 = vld [vmem:[#allocation3 + $0x170] sm:$0xf] }
  0xd5   :  { %v963_v29 = vadd.f32 %v962_v21, %v833_v20  ;;  %2327 = vmatmul.msk.f32.gmra.mxu3 %vm1392_vm1, %v1320_v26 }
  0xd6   :  { %v1574_v25 = vadd.f32 %v1573_v38, %v1089_v19  ;;  %872 = vmatmul.bf16.gmra.mxu0 %v2052_v16  ;;  %v1321_v38 = vld [vmem:[%s3054_s2 + $0xd0] sm:$0xff]  ;;  %v2084_v19 = vor.u32 %v2391_v9, %v2083_v8 }
  0xd7   :  { %1001 = vmatmul.bf16.gmra.mxu1 %v2056_v17 }
  0xd8   :  { %v1711_v27 = vadd.f32 %v2849_v18, %v1574_v25  ;;  %1130 = vmatmul.bf16.gmra.mxu2 %v2060_v22  ;;  %v1585_v35 = vpop.f32.mrf.mxu3 }
  0xda   :  { %v1759_v30 = vmax.f32 %v1711_v27, 0.0 }
  0xdb   :  { %v1091_v31 = vpop.f32.mrf.mxu2  ;;  %v835_v33 = vpop.f32.mrf.mxu0 }
  0xdc   :  { %v2459_v32 = vpack.c.bf16 %v1759_v30, %v1758_v28  ;;  %v964_v34 = vpop.f32.mrf.mxu1  ;;  %v1092_v36 = vadd.f32 %v1091_v31, %v963_v29 }
  0xdd   :  { %v965_v44 = vadd.f32 %v964_v34, %v835_v33  ;;  %2328 = vmatmul.msk.f32.gmra.mxu3 %vm1392_vm1, %v1321_v38  ;;  %v2087_v34 = vld [vmem:[#allocation3 + $0x150] sm:$0xf]  ;;  %v2089_v38 = vld [vmem:[#allocation3 + $0x15c] sm:$0xf0] }
  0xde   :  { %2567 = vst [vmem:[#allocation6 + $0x10] sm:$0xff] %v2459_v32   ;;  %v1577_v45 = vadd.f32 %v2864_v56, %v1092_v36  ;;  %v1322_v56 = vld [vmem:[%s3054_s2 + $0xd8] sm:$0xff] }
  0xdf   :  { %v2393_v36 = vld [vmem:[#allocation3 + $0x158] sm:$0xf0] }
  0xe0   :  { %v2890_v53 = vpop.f32.mrf.mxu3  ;;  %v1712_v54 = vadd.f32 %v2849_v18, %v1577_v45  ;;  %v2092_v45 = vor.u32 %v2392_v37, %v2089_v38  ;;  %v2400_v37 = vld [vmem:[#allocation3 + $0x190] sm:$0xf0] }
  0xe2   :  { %v1760_v58 = vmax.f32 %v1712_v54, 0.0 }
  0xe3   :  { %v1093_v46 = vpop.f32.mrf.mxu2  ;;  %v838_v50 = vpop.f32.mrf.mxu0 }
  0xe4   :  { %v1094_v49 = vadd.f32 %v1093_v46, %v965_v44  ;;  %v967_v51 = vpop.f32.mrf.mxu1  ;;  %v2088_v44 = vor.u32 %v2393_v36, %v2087_v34  ;;  %v2398_v34 = vld [vmem:[#allocation3 + $0x184] sm:$0xf]  ;;  %v2119_v36 = vld [vmem:[#allocation3 + $0x188] sm:$0xf] }
  0xe5   :  { %v968_v59 = vadd.f32 %v967_v51, %v838_v50  ;;  %2329 = vmatmul.msk.f32.gmra.mxu3 %vm1392_vm1, %v1322_v56 }
  0xe6   :  { %v1580_v55 = vadd.f32 %v1579_v4, %v1094_v49  ;;  %877 = vmatmul.bf16.gmra.mxu0 %v2064_v47  ;;  %v1323_v4 = vld [vmem:[%s3054_s2 + $0xe0] sm:$0xff]  ;;  %v2096_v49 = vor.u32 %v2394_v40, %v2095_v39 }
  0xe7   :  { %1006 = vmatmul.bf16.gmra.mxu1 %v2068_v48 }
  0xe8   :  { %v1713_v57 = vadd.f32 %v2849_v18, %v1580_v55  ;;  %1135 = vmatmul.bf16.gmra.mxu2 %v2072_v52  ;;  %v1591_v1 = vpop.f32.mrf.mxu3 }
  0xea   :  { %v1761_v60 = vmax.f32 %v1713_v57, 0.0 }
  0xeb   :  { %v1096_v61 = vpop.f32.mrf.mxu2  ;;  %v840_v63 = vpop.f32.mrf.mxu0 }
  0xec   :  { %v2464_v62 = vpack.c.bf16 %v1761_v60, %v1760_v58  ;;  %v969_v0 = vpop.f32.mrf.mxu1  ;;  %v1097_v2 = vadd.f32 %v1096_v61, %v968_v59 }
  0xed   :  { %v970_v10 = vadd.f32 %v969_v0, %v840_v63  ;;  %2330 = vmatmul.msk.f32.gmra.mxu3 %vm1392_vm1, %v1323_v4  ;;  %v2099_v0 = vld [vmem:[#allocation3 + $0x168] sm:$0xf]  ;;  %v2101_v4 = vld [vmem:[#allocation3 + $0x174] sm:$0xf0] }
  0xee   :  { %2568 = vst [vmem:[#allocation6 + $0x18] sm:$0xff] %v2464_v62   ;;  %v1583_v11 = vadd.f32 %v2877_v23, %v1097_v2  ;;  %v1324_v23 = vld [vmem:[%s3054_s2 + $0xe8] sm:$0xff]  ;;  %v2396_v2 = vld [vmem:[#allocation3 + $0x170] sm:$0xf0] }
  0xf0   :  { %v2903_v20 = vpop.f32.mrf.mxu3  ;;  %v1714_v21 = vadd.f32 %v2849_v18, %v1583_v11  ;;  %v2104_v11 = vor.u32 %v2395_v3, %v2101_v4  ;;  %v2403_v3 = vld [vmem:[#allocation3 + $0x1a8] sm:$0xf0] }
  0xf2   :  { %v1762_v25 = vmax.f32 %v1714_v21, 0.0 }
  0xf3   :  { %v1098_v12 = vpop.f32.mrf.mxu2  ;;  %v843_v16 = vpop.f32.mrf.mxu0 }
  0xf4   :  { %v1099_v15 = vadd.f32 %v1098_v12, %v970_v10  ;;  %v972_v17 = vpop.f32.mrf.mxu1  ;;  %v2100_v10 = vor.u32 %v2396_v2, %v2099_v0  ;;  %v2401_v0 = vld [vmem:[#allocation3 + $0x19c] sm:$0xf]  ;;  %v2131_v2 = vld [vmem:[#allocation3 + $0x1a0] sm:$0xf] }
  0xf5   :  { %v973_v26 = vadd.f32 %v972_v17, %v843_v16  ;;  %2331 = vmatmul.msk.f32.gmra.mxu3 %vm1392_vm1, %v1324_v23 }
  0xf6   :  { %v1586_v22 = vadd.f32 %v1585_v35, %v1099_v15  ;;  %882 = vmatmul.bf16.gmra.mxu0 %v2076_v13  ;;  %v1325_v35 = vld [vmem:[%s3054_s2 + $0xf0] sm:$0xff]  ;;  %v2108_v15 = vor.u32 %v2397_v6, %v2107_v5 }
  0xf7   :  { %1011 = vmatmul.bf16.gmra.mxu1 %v2080_v14 }
  0xf8   :  { %v1715_v24 = vadd.f32 %v2849_v18, %v1586_v22  ;;  %1140 = vmatmul.bf16.gmra.mxu2 %v2084_v19  ;;  %v1597_v32 = vpop.f32.mrf.mxu3 }
  0xfa   :  { %v1763_v27 = vmax.f32 %v1715_v24, 0.0 }
  0xfb   :  { %v1101_v28 = vpop.f32.mrf.mxu2  ;;  %v845_v30 = vpop.f32.mrf.mxu0 }
  0xfc   :  { %v2469_v29 = vpack.c.bf16 %v1763_v27, %v1762_v25  ;;  %v974_v31 = vpop.f32.mrf.mxu1  ;;  %v1102_v33 = vadd.f32 %v1101_v28, %v973_v26 }
  0xfd   :  { %v975_v41 = vadd.f32 %v974_v31, %v845_v30  ;;  %2332 = vmatmul.msk.f32.gmra.mxu3 %vm1392_vm1, %v1325_v35  ;;  %v2111_v31 = vld [vmem:[#allocation3 + $0x180] sm:$0xf]  ;;  %v2113_v35 = vld [vmem:[#allocation3 + $0x18c] sm:$0xf0] }
  0xfe   :  { %2569 = vst [vmem:[#allocation6 + $0x20] sm:$0xff] %v2469_v29   ;;  %v1589_v42 = vadd.f32 %v2890_v53, %v1102_v33  ;;  %v1326_v53 = vld [vmem:[%s3054_s2 + $0xf8] sm:$0xff]  ;;  %v2399_v33 = vld [vmem:[#allocation3 + $0x188] sm:$0xf0] }
 0x100   :  { %v2916_v50 = vpop.f32.mrf.mxu3  ;;  %v1716_v51 = vadd.f32 %v2849_v18, %v1589_v42  ;;  %v2116_v42 = vor.u32 %v2398_v34, %v2113_v35  ;;  %v2406_v34 = vld [vmem:[#allocation3 + $0x1c0] sm:$0xf0] }
 0x102   :  { %v1764_v55 = vmax.f32 %v1716_v51, 0.0 }
 0x103   :  { %v1103_v43 = vpop.f32.mrf.mxu2  ;;  %v848_v47 = vpop.f32.mrf.mxu0 }
 0x104   :  { %v1104_v46 = vadd.f32 %v1103_v43, %v975_v41  ;;  %v977_v48 = vpop.f32.mrf.mxu1  ;;  %v2112_v41 = vor.u32 %v2399_v33, %v2111_v31  ;;  %v2404_v31 = vld [vmem:[#allocation3 + $0x1b4] sm:$0xf]  ;;  %v2143_v33 = vld [vmem:[#allocation3 + $0x1b8] sm:$0xf] }
 0x105   :  { %v978_v56 = vadd.f32 %v977_v48, %v848_v47  ;;  %2333 = vmatmul.msk.f32.gmra.mxu3 %vm1392_vm1, %v1326_v53 }
 0x106   :  { %v1592_v52 = vadd.f32 %v1591_v1, %v1104_v46  ;;  %887 = vmatmul.bf16.gmra.mxu0 %v2088_v44  ;;  %v1327_v1 = vld [vmem:[%s3054_s2 + $0x100] sm:$0xff]  ;;  %v2120_v46 = vor.u32 %v2400_v37, %v2119_v36 }
 0x107   :  { %1016 = vmatmul.bf16.gmra.mxu1 %v2092_v45 }
 0x108   :  { %v1717_v54 = vadd.f32 %v2849_v18, %v1592_v52  ;;  %1145 = vmatmul.bf16.gmra.mxu2 %v2096_v49  ;;  %v1603_v62 = vpop.f32.mrf.mxu3 }
 0x10a   :  { %v1765_v57 = vmax.f32 %v1717_v54, 0.0 }
 0x10b   :  { %v1106_v58 = vpop.f32.mrf.mxu2  ;;  %v850_v60 = vpop.f32.mrf.mxu0 }
 0x10c   :  { %v2474_v59 = vpack.c.bf16 %v1765_v57, %v1764_v55  ;;  %v979_v61 = vpop.f32.mrf.mxu1  ;;  %v1107_v63 = vadd.f32 %v1106_v58, %v978_v56 }
 0x10d   :  { %v980_v7 = vadd.f32 %v979_v61, %v850_v60  ;;  %2334 = vmatmul.msk.f32.gmra.mxu3 %vm1392_vm1, %v1327_v1  ;;  %v2123_v61 = vld [vmem:[#allocation3 + $0x198] sm:$0xf]  ;;  %v2125_v1 = vld [vmem:[#allocation3 + $0x1a4] sm:$0xf0] }
 0x10e   :  { %2570 = vst [vmem:[#allocation6 + $0x28] sm:$0xff] %v2474_v59   ;;  %v1595_v8 = vadd.f32 %v2903_v20, %v1107_v63  ;;  %v1328_v20 = vld [vmem:[%s3054_s2 + $0x108] sm:$0xff]  ;;  %v2402_v63 = vld [vmem:[#allocation3 + $0x1a0] sm:$0xf0] }
 0x110   :  { %v2929_v16 = vpop.f32.mrf.mxu3  ;;  %v1718_v17 = vadd.f32 %v2849_v18, %v1595_v8  ;;  %v2128_v8 = vor.u32 %v2401_v0, %v2125_v1  ;;  %v2409_v0 = vld [vmem:[#allocation3 + $0x1d8] sm:$0xf0] }
 0x112   :  { %v1766_v22 = vmax.f32 %v1718_v17, 0.0 }
 0x113   :  { %v1108_v9 = vpop.f32.mrf.mxu2  ;;  %v853_v13 = vpop.f32.mrf.mxu0 }
 0x114   :  { %v1109_v12 = vadd.f32 %v1108_v9, %v980_v7  ;;  %v982_v14 = vpop.f32.mrf.mxu1  ;;  %v2124_v7 = vor.u32 %v2402_v63, %v2123_v61  ;;  %v2407_v61 = vld [vmem:[#allocation3 + $0x1cc] sm:$0xf]  ;;  %v2155_v63 = vld [vmem:[#allocation3 + $0x1d0] sm:$0xf] }
 0x115   :  { %v983_v23 = vadd.f32 %v982_v14, %v853_v13  ;;  %2335 = vmatmul.msk.f32.gmra.mxu3 %vm1392_vm1, %v1328_v20 }
 0x116   :  { %v1598_v19 = vadd.f32 %v1597_v32, %v1109_v12  ;;  %892 = vmatmul.bf16.gmra.mxu0 %v2100_v10  ;;  %v1329_v32 = vld [vmem:[%s3054_s2 + $0x110] sm:$0xff]  ;;  %v2132_v12 = vor.u32 %v2403_v3, %v2131_v2 }
 0x117   :  { %1021 = vmatmul.bf16.gmra.mxu1 %v2104_v11 }
 0x118   :  { %v1719_v21 = vadd.f32 %v2849_v18, %v1598_v19  ;;  %1150 = vmatmul.bf16.gmra.mxu2 %v2108_v15  ;;  %v1609_v29 = vpop.f32.mrf.mxu3 }
 0x11a   :  { %v1767_v24 = vmax.f32 %v1719_v21, 0.0 }
 0x11b   :  { %v1111_v25 = vpop.f32.mrf.mxu2  ;;  %v855_v27 = vpop.f32.mrf.mxu0 }
 0x11c   :  { %v2479_v26 = vpack.c.bf16 %v1767_v24, %v1766_v22  ;;  %v984_v28 = vpop.f32.mrf.mxu1  ;;  %v1112_v30 = vadd.f32 %v1111_v25, %v983_v23 }
 0x11d   :  { %v985_v38 = vadd.f32 %v984_v28, %v855_v27  ;;  %2336 = vmatmul.msk.f32.gmra.mxu3 %vm1392_vm1, %v1329_v32  ;;  %v2135_v28 = vld [vmem:[#allocation3 + $0x1b0] sm:$0xf]  ;;  %v2137_v32 = vld [vmem:[#allocation3 + $0x1bc] sm:$0xf0] }
 0x11e   :  { %2571 = vst [vmem:[#allocation6 + $0x30] sm:$0xff] %v2479_v26   ;;  %v1601_v39 = vadd.f32 %v2916_v50, %v1112_v30  ;;  %v1330_v50 = vld [vmem:[%s3054_s2 + $0x118] sm:$0xff] }
 0x11f   :  { %v2405_v30 = vld [vmem:[#allocation3 + $0x1b8] sm:$0xf0] }
 0x120   :  { %v2942_v47 = vpop.f32.mrf.mxu3  ;;  %v1720_v48 = vadd.f32 %v2849_v18, %v1601_v39  ;;  %v2140_v39 = vor.u32 %v2404_v31, %v2137_v32  ;;  %v2412_v31 = vld [vmem:[#allocation3 + $0x1f0] sm:$0xf0] }
 0x122   :  { %v1768_v52 = vmax.f32 %v1720_v48, 0.0 }
 0x123   :  { %v1113_v40 = vpop.f32.mrf.mxu2  ;;  %v858_v44 = vpop.f32.mrf.mxu0 }
 0x124   :  { %v1114_v43 = vadd.f32 %v1113_v40, %v985_v38  ;;  %v987_v45 = vpop.f32.mrf.mxu1  ;;  %v2136_v38 = vor.u32 %v2405_v30, %v2135_v28  ;;  %v2410_v28 = vld [vmem:[#allocation3 + $0x1e4] sm:$0xf]  ;;  %v2167_v30 = vld [vmem:[#allocation3 + $0x1e8] sm:$0xf] }
 0x125   :  { %v988_v53 = vadd.f32 %v987_v45, %v858_v44  ;;  %2337 = vmatmul.msk.f32.gmra.mxu3 %vm1392_vm1, %v1330_v50 }
 0x126   :  { %v1604_v49 = vadd.f32 %v1603_v62, %v1114_v43  ;;  %897 = vmatmul.bf16.gmra.mxu0 %v2112_v41  ;;  %v1331_v62 = vld [vmem:[%s3054_s2 + $0x120] sm:$0xff]  ;;  %v2144_v43 = vor.u32 %v2406_v34, %v2143_v33 }
 0x127   :  { %1026 = vmatmul.bf16.gmra.mxu1 %v2116_v42 }
 0x128   :  { %v1721_v51 = vadd.f32 %v2849_v18, %v1604_v49  ;;  %1155 = vmatmul.bf16.gmra.mxu2 %v2120_v46  ;;  %v1615_v59 = vpop.f32.mrf.mxu3 }
 0x12a   :  { %v1769_v54 = vmax.f32 %v1721_v51, 0.0 }
 0x12b   :  { %v1116_v55 = vpop.f32.mrf.mxu2  ;;  %v860_v57 = vpop.f32.mrf.mxu0 }
 0x12c   :  { %v2484_v56 = vpack.c.bf16 %v1769_v54, %v1768_v52  ;;  %v989_v58 = vpop.f32.mrf.mxu1  ;;  %v1117_v60 = vadd.f32 %v1116_v55, %v988_v53 }
 0x12d   :  { %v990_v4 = vadd.f32 %v989_v58, %v860_v57  ;;  %2338 = vmatmul.msk.f32.gmra.mxu3 %vm1392_vm1, %v1331_v62  ;;  %v2147_v58 = vld [vmem:[#allocation3 + $0x1c8] sm:$0xf]  ;;  %v2149_v62 = vld [vmem:[#allocation3 + $0x1d4] sm:$0xf0] }
 0x12e   :  { %2572 = vst [vmem:[#allocation6 + $0x38] sm:$0xff] %v2484_v56   ;;  %v1607_v5 = vadd.f32 %v2929_v16, %v1117_v60  ;;  %v1332_v16 = vld [vmem:[%s3054_s2 + $0x128] sm:$0xff]  ;;  %v2408_v60 = vld [vmem:[#allocation3 + $0x1d0] sm:$0xf0] }
 0x130   :  { %v2955_v13 = vpop.f32.mrf.mxu3  ;;  %v1722_v14 = vadd.f32 %v2849_v18, %v1607_v5  ;;  %v2152_v5 = vor.u32 %v2407_v61, %v2149_v62  ;;  %v2415_v61 = vld [vmem:[#allocation3 + $0x208] sm:$0xf0] }
 0x132   :  { %v1770_v19 = vmax.f32 %v1722_v14, 0.0 }
 0x133   :  { %v1118_v6 = vpop.f32.mrf.mxu2  ;;  %v863_v10 = vpop.f32.mrf.mxu0 }
 0x134   :  { %v1119_v9 = vadd.f32 %v1118_v6, %v990_v4  ;;  %v992_v11 = vpop.f32.mrf.mxu1  ;;  %v2148_v4 = vor.u32 %v2408_v60, %v2147_v58  ;;  %v2413_v58 = vld [vmem:[#allocation3 + $0x1fc] sm:$0xf]  ;;  %v2179_v60 = vld [vmem:[#allocation3 + $0x200] sm:$0xf] }
 0x135   :  { %v993_v20 = vadd.f32 %v992_v11, %v863_v10  ;;  %2339 = vmatmul.msk.f32.gmra.mxu3 %vm1392_vm1, %v1332_v16 }
 0x136   :  { %v1610_v15 = vadd.f32 %v1609_v29, %v1119_v9  ;;  %902 = vmatmul.bf16.gmra.mxu0 %v2124_v7  ;;  %v1333_v29 = vld [vmem:[%s3054_s2 + $0x130] sm:$0xff]  ;;  %v2156_v9 = vor.u32 %v2409_v0, %v2155_v63 }
 0x137   :  { %1031 = vmatmul.bf16.gmra.mxu1 %v2128_v8 }
 0x138   :  { %v1723_v17 = vadd.f32 %v2849_v18, %v1610_v15  ;;  %1160 = vmatmul.bf16.gmra.mxu2 %v2132_v12  ;;  %v1621_v26 = vpop.f32.mrf.mxu3 }
 0x13a   :  { %v1771_v21 = vmax.f32 %v1723_v17, 0.0 }
 0x13b   :  { %v1121_v22 = vpop.f32.mrf.mxu2  ;;  %v865_v24 = vpop.f32.mrf.mxu0 }
 0x13c   :  { %v2489_v23 = vpack.c.bf16 %v1771_v21, %v1770_v19  ;;  %v994_v25 = vpop.f32.mrf.mxu1  ;;  %v1122_v27 = vadd.f32 %v1121_v22, %v993_v20 }
 0x13d   :  { %v995_v35 = vadd.f32 %v994_v25, %v865_v24  ;;  %2340 = vmatmul.msk.f32.gmra.mxu3 %vm1392_vm1, %v1333_v29  ;;  %v2159_v25 = vld [vmem:[#allocation3 + $0x1e0] sm:$0xf]  ;;  %v2161_v29 = vld [vmem:[#allocation3 + $0x1ec] sm:$0xf0] }
 0x13e   :  { %2573 = vst [vmem:[#allocation6 + $0x40] sm:$0xff] %v2489_v23   ;;  %v1613_v36 = vadd.f32 %v2942_v47, %v1122_v27  ;;  %v1334_v47 = vld [vmem:[%s3054_s2 + $0x138] sm:$0xff]  ;;  %v2411_v27 = vld [vmem:[#allocation3 + $0x1e8] sm:$0xf0] }
 0x140   :  { %v2968_v44 = vpop.f32.mrf.mxu3  ;;  %v1724_v45 = vadd.f32 %v2849_v18, %v1613_v36  ;;  %v2164_v36 = vor.u32 %v2410_v28, %v2161_v29  ;;  %v2418_v28 = vld [vmem:[#allocation3 + $0x220] sm:$0xf0] }
 0x142   :  { %v1772_v49 = vmax.f32 %v1724_v45, 0.0 }
 0x143   :  { %v1123_v37 = vpop.f32.mrf.mxu2  ;;  %v868_v41 = vpop.f32.mrf.mxu0 }
 0x144   :  { %v1124_v40 = vadd.f32 %v1123_v37, %v995_v35  ;;  %v997_v42 = vpop.f32.mrf.mxu1  ;;  %v2160_v35 = vor.u32 %v2411_v27, %v2159_v25  ;;  %v2416_v25 = vld [vmem:[#allocation3 + $0x214] sm:$0xf]  ;;  %v2191_v27 = vld [vmem:[#allocation3 + $0x218] sm:$0xf] }
 0x145   :  { %v998_v50 = vadd.f32 %v997_v42, %v868_v41  ;;  %2341 = vmatmul.msk.f32.gmra.mxu3 %vm1392_vm1, %v1334_v47 }
 0x146   :  { %v1616_v46 = vadd.f32 %v1615_v59, %v1124_v40  ;;  %907 = vmatmul.bf16.gmra.mxu0 %v2136_v38  ;;  %v1335_v59 = vld [vmem:[%s3054_s2 + $0x140] sm:$0xff]  ;;  %v2168_v40 = vor.u32 %v2412_v31, %v2167_v30 }
 0x147   :  { %1036 = vmatmul.bf16.gmra.mxu1 %v2140_v39 }
 0x148   :  { %v1725_v48 = vadd.f32 %v2849_v18, %v1616_v46  ;;  %1165 = vmatmul.bf16.gmra.mxu2 %v2144_v43  ;;  %v1627_v56 = vpop.f32.mrf.mxu3 }
 0x14a   :  { %v1773_v51 = vmax.f32 %v1725_v48, 0.0 }
 0x14b   :  { %v1126_v52 = vpop.f32.mrf.mxu2  ;;  %v870_v54 = vpop.f32.mrf.mxu0 }
 0x14c   :  { %v2494_v53 = vpack.c.bf16 %v1773_v51, %v1772_v49  ;;  %v999_v55 = vpop.f32.mrf.mxu1  ;;  %v1127_v57 = vadd.f32 %v1126_v52, %v998_v50 }
 0x14d   :  { %v1000_v1 = vadd.f32 %v999_v55, %v870_v54  ;;  %2342 = vmatmul.msk.f32.gmra.mxu3 %vm1392_vm1, %v1335_v59  ;;  %v2171_v55 = vld [vmem:[#allocation3 + $0x1f8] sm:$0xf]  ;;  %v2173_v59 = vld [vmem:[#allocation3 + $0x204] sm:$0xf0] }
 0x14e   :  { %2574 = vst [vmem:[#allocation6 + $0x48] sm:$0xff] %v2494_v53   ;;  %v1619_v2 = vadd.f32 %v2955_v13, %v1127_v57  ;;  %v1336_v13 = vld [vmem:[%s3054_s2 + $0x148] sm:$0xff]  ;;  %v2414_v57 = vld [vmem:[#allocation3 + $0x200] sm:$0xf0] }
 0x150   :  { %v2981_v10 = vpop.f32.mrf.mxu3  ;;  %v1726_v11 = vadd.f32 %v2849_v18, %v1619_v2  ;;  %v2176_v2 = vor.u32 %v2413_v58, %v2173_v59 }
 0x152   :  { %v1774_v15 = vmax.f32 %v1726_v11, 0.0  ;;  %v1340_v11 = vld [vmem:[%s3054_s2 + $0x168] sm:$0xff] }
 0x153   :  { %v1128_v3 = vpop.f32.mrf.mxu2  ;;  %v873_v7 = vpop.f32.mrf.mxu0 }
 0x154   :  { %v1129_v6 = vadd.f32 %v1128_v3, %v1000_v1  ;;  %v1002_v8 = vpop.f32.mrf.mxu1  ;;  %v2172_v1 = vor.u32 %v2414_v57, %v2171_v55  ;;  %v2197_v55 = vld [vmem:[#allocation3 + $0x234] sm:$0xf0]  ;;  %v2421_v57 = vld [vmem:[#allocation3 + $0x238] sm:$0xf0] }
 0x155   :  { %v1003_v16 = vadd.f32 %v1002_v8, %v873_v7  ;;  %2343 = vmatmul.msk.f32.gmra.mxu3 %vm1392_vm1, %v1336_v13 }
 0x156   :  { %v1622_v12 = vadd.f32 %v1621_v26, %v1129_v6  ;;  %912 = vmatmul.bf16.gmra.mxu0 %v2148_v4  ;;  %v1337_v26 = vld [vmem:[%s3054_s2 + $0x150] sm:$0xff]  ;;  %v2180_v6 = vor.u32 %v2415_v61, %v2179_v60 }
 0x157   :  { %1041 = vmatmul.bf16.gmra.mxu1 %v2152_v5 }
 0x158   :  { %v1727_v14 = vadd.f32 %v2849_v18, %v1622_v12  ;;  %1170 = vmatmul.bf16.gmra.mxu2 %v2156_v9  ;;  %v1633_v23 = vpop.f32.mrf.mxu3 }
 0x15a   :  { %v1775_v17 = vmax.f32 %v1727_v14, 0.0 }
 0x15b   :  { %v1131_v19 = vpop.f32.mrf.mxu2  ;;  %v875_v21 = vpop.f32.mrf.mxu0 }
 0x15c   :  { %v2499_v20 = vpack.c.bf16 %v1775_v17, %v1774_v15  ;;  %v1004_v22 = vpop.f32.mrf.mxu1  ;;  %v1132_v24 = vadd.f32 %v1131_v19, %v1003_v16 }
 0x15d   :  { %v1005_v32 = vadd.f32 %v1004_v22, %v875_v21  ;;  %2344 = vmatmul.msk.f32.gmra.mxu3 %vm1392_vm1, %v1337_v26  ;;  %v2183_v22 = vld [vmem:[#allocation3 + $0x210] sm:$0xf]  ;;  %v2185_v26 = vld [vmem:[#allocation3 + $0x21c] sm:$0xf0] }
 0x15e   :  { %2575 = vst [vmem:[#allocation6 + $0x50] sm:$0xff] %v2499_v20   ;;  %v1625_v33 = vadd.f32 %v2968_v44, %v1132_v24  ;;  %v1338_v44 = vld [vmem:[%s3054_s2 + $0x158] sm:$0xff] }
 0x15f   :  { %v2417_v24 = vld [vmem:[#allocation3 + $0x218] sm:$0xf0] }
 0x160   :  { %v2994_v41 = vpop.f32.mrf.mxu3  ;;  %v1728_v42 = vadd.f32 %v2849_v18, %v1625_v33  ;;  %v2188_v33 = vor.u32 %v2416_v25, %v2185_v26 }
 0x162   :  { %v1776_v46 = vmax.f32 %v1728_v42, 0.0  ;;  %v1342_v42 = vld [vmem:[%s3054_s2 + $0x178] sm:$0xff] }
 0x163   :  { %v1133_v34 = vpop.f32.mrf.mxu2  ;;  %v878_v38 = vpop.f32.mrf.mxu0 }
 0x164   :  { %v1134_v37 = vadd.f32 %v1133_v34, %v1005_v32  ;;  %v1007_v39 = vpop.f32.mrf.mxu1  ;;  %v2184_v32 = vor.u32 %v2417_v24, %v2183_v22 }
 0x165   :  { %v1008_v47 = vadd.f32 %v1007_v39, %v878_v38  ;;  %2345 = vmatmul.msk.f32.gmra.mxu3 %vm1392_vm1, %v1338_v44 }
 0x166   :  { %v1628_v43 = vadd.f32 %v1627_v56, %v1134_v37  ;;  %917 = vmatmul.bf16.gmra.mxu0 %v2160_v35  ;;  %v1339_v56 = vld [vmem:[%s3054_s2 + $0x160] sm:$0xff]  ;;  %v2192_v37 = vor.u32 %v2418_v28, %v2191_v27 }
 0x167   :  { %1046 = vmatmul.bf16.gmra.mxu1 %v2164_v36 }
 0x168   :  { %v1729_v45 = vadd.f32 %v2849_v18, %v1628_v43  ;;  %1175 = vmatmul.bf16.gmra.mxu2 %v2168_v40  ;;  %v1639_v53 = vpop.f32.mrf.mxu3 }
 0x16a   :  { %v1777_v48 = vmax.f32 %v1729_v45, 0.0 }
 0x16b   :  { %v1136_v49 = vpop.f32.mrf.mxu2  ;;  %v880_v51 = vpop.f32.mrf.mxu0 }
 0x16c   :  { %v2504_v50 = vpack.c.bf16 %v1777_v48, %v1776_v46  ;;  %v1009_v52 = vpop.f32.mrf.mxu1  ;;  %v1137_v54 = vadd.f32 %v1136_v49, %v1008_v47 }
 0x16d   :  { %v1010_v62 = vadd.f32 %v1009_v52, %v880_v51  ;;  %2346 = vmatmul.msk.f32.gmra.mxu3 %vm1392_vm1, %v1339_v56  ;;  %v2195_v52 = vld [vmem:[#allocation3 + $0x228] sm:$0xf]  ;;  %v2203_v56 = vld [vmem:[#allocation3 + $0x230] sm:$0xf] }
 0x16e   :  { %2576 = vst [vmem:[#allocation6 + $0x58] sm:$0xff] %v2504_v50   ;;  %v1631_v63 = vadd.f32 %v2981_v10, %v1137_v54  ;;  %v2419_v54 = vld [vmem:[#allocation3 + $0x22c] sm:$0xf] }
 0x16f   :  { %v2200_v61 = vor.u32 %v2419_v54, %v2197_v55 }
 0x170   :  { %v1642_v7 = vpop.f32.mrf.mxu3  ;;  %v1730_v8 = vadd.f32 %v2849_v18, %v1631_v63 }
 0x172   :  { %v1778_v12 = vmax.f32 %v1730_v8, 0.0 }
 0x173   :  { %v1138_v0 = vpop.f32.mrf.mxu2  ;;  %v883_v4 = vpop.f32.mrf.mxu0 }
 0x174   :  { %v1139_v3 = vadd.f32 %v1138_v0, %v1010_v62  ;;  %v1012_v5 = vpop.f32.mrf.mxu1 }
 0x175   :  { %v1013_v13 = vadd.f32 %v1012_v5, %v883_v4  ;;  %2347 = vmatmul.msk.f32.gmra.mxu3 %vm1392_vm1, %v1340_v11 }
 0x176   :  { %v1634_v9 = vadd.f32 %v1633_v23, %v1139_v3  ;;  %922 = vmatmul.bf16.gmra.mxu0 %v2172_v1  ;;  %v1341_v23 = vld [vmem:[%s3054_s2 + $0x170] sm:$0xff]  ;;  %v2204_v1 = vor.u32 %v2421_v57, %v2203_v56  ;;  %v3027_v3 = vld [vmem:[%s3056_s4] ss:$0 sm:$0xff]  ;;  %s2652_s4 = smov [#allocation6]  }
 0x177   :  { %1051 = vmatmul.bf16.gmra.mxu1 %v2176_v2  ;;  %s1902_s9 = sshll.u32 %s2652_s4, 4  ;;  %s1903_s9 = int_to_ptr.vmem [resolvable:$true] %s1902_s9 }
 0x178   :  { %v1731_v10 = vadd.f32 %v2849_v18, %v1634_v9  ;;  %1180 = vmatmul.bf16.gmra.mxu2 %v2180_v6  ;;  %v1645_v20 = vpop.f32.mrf.mxu3 }
 0x17a   :  { %v1779_v14 = vmax.f32 %v1731_v10, 0.0 }
 0x17b   :  { %v1141_v15 = vpop.f32.mrf.mxu2  ;;  %v885_v17 = vpop.f32.mrf.mxu0 }
 0x17c   :  { %v2509_v16 = vpack.c.bf16 %v1779_v14, %v1778_v12  ;;  %v1014_v19 = vpop.f32.mrf.mxu1  ;;  %v1142_v21 = vadd.f32 %v1141_v15, %v1013_v13 }
 0x17d   :  { %v1015_v29 = vadd.f32 %v1014_v19, %v885_v17  ;;  %2348 = vmatmul.msk.f32.gmra.mxu3 %vm1392_vm1, %v1341_v23 }
 0x17e   :  { %2577 = vst [vmem:[#allocation6 + $0x60] sm:$0xff] %v2509_v16   ;;  %v1637_v30 = vadd.f32 %v2994_v41, %v1142_v21 }
 0x180   :  { %v1648_v38 = vpop.f32.mrf.mxu3  ;;  %v1732_v39 = vadd.f32 %v2849_v18, %v1637_v30 }
 0x182   :  { %v1780_v43 = vmax.f32 %v1732_v39, 0.0 }
 0x183   :  { %v1143_v31 = vpop.f32.mrf.mxu2  ;;  %v888_v35 = vpop.f32.mrf.mxu0 }
 0x184   :  { %v1144_v34 = vadd.f32 %v1143_v31, %v1015_v29  ;;  %v1017_v36 = vpop.f32.mrf.mxu1 }
 0x185   :  { %v1018_v44 = vadd.f32 %v1017_v36, %v888_v35  ;;  %2349 = vmatmul.msk.f32.gmra.mxu3 %vm1392_vm1, %v1342_v42 }
 0x186   :  { %v1640_v40 = vadd.f32 %v1639_v53, %v1144_v34  ;;  %927 = vmatmul.bf16.gmra.mxu0 %v2184_v32  ;;  %v2420_v53 = vld [vmem:[#allocation3 + $0x230] sm:$0xf0] }
 0x187   :  { %1056 = vmatmul.bf16.gmra.mxu1 %v2188_v33  ;;  %v2196_v60 = vor.u32 %v2420_v53, %v2195_v52 }
 0x188   :  { %v1733_v41 = vadd.f32 %v2849_v18, %v1640_v40  ;;  %1185 = vmatmul.bf16.gmra.mxu2 %v2192_v37  ;;  %v1651_v50 = vpop.f32.mrf.mxu3 }
 0x18a   :  { %v1781_v45 = vmax.f32 %v1733_v41, 0.0 }
 0x18b   :  { %v1146_v46 = vpop.f32.mrf.mxu2  ;;  %v890_v48 = vpop.f32.mrf.mxu0 }
 0x18c   :  { %v2514_v47 = vpack.c.bf16 %v1781_v45, %v1780_v43  ;;  %v1019_v49 = vpop.f32.mrf.mxu1  ;;  %v1147_v51 = vadd.f32 %v1146_v46, %v1018_v44 }
 0x18d   :  { %v1020_v18 = vadd.f32 %v1019_v49, %v890_v48 }
 0x18e   :  { %2578 = vst [vmem:[#allocation6 + $0x68] sm:$0xff] %v2514_v47   ;;  %v1643_v58 = vadd.f32 %v1642_v7, %v1147_v51 }
 0x190   :  { %v1654_v2 = vpop.f32.mrf.mxu3  ;;  %v1734_v4 = vadd.f32 %v3027_v3, %v1643_v58 }
 0x192   :  { %v1782_v7 = vmax.f32 %v1734_v4, 0.0 }
 0x193   :  { %v1148_v59 = vpop.f32.mrf.mxu2  ;;  %v893_v63 = vpop.f32.mrf.mxu0 }
 0x194   :  { %v1149_v62 = vadd.f32 %v1148_v59, %v1020_v18  ;;  %v1022_v0 = vpop.f32.mrf.mxu1 }
 0x195   :  { %v1023_v8 = vadd.f32 %v1022_v0, %v893_v63 }
 0x196   :  { %v1646_v5 = vadd.f32 %v1645_v20, %v1149_v62  ;;  %932 = vmatmul.bf16.gmra.mxu0 %v2196_v60 }
 0x197   :  { %1061 = vmatmul.bf16.gmra.mxu1 %v2200_v61 }
 0x198   :  { %v1735_v6 = vadd.f32 %v3027_v3, %v1646_v5  ;;  %1190 = vmatmul.bf16.gmra.mxu2 %v2204_v1  ;;  %v1657_v14 = vpop.f32.mrf.mxu3 }
 0x19a   :  { %v1783_v9 = vmax.f32 %v1735_v6, 0.0 }
 0x19b   :  { %v1151_v11 = vpop.f32.mrf.mxu2  ;;  %v895_v12 = vpop.f32.mrf.mxu0 }
 0x19c   :  { %v2519_v10 = vpack.c.bf16 %v1783_v9, %v1782_v7  ;;  %v1024_v13 = vpop.f32.mrf.mxu1  ;;  %v1152_v15 = vadd.f32 %v1151_v11, %v1023_v8 }
 0x19d   :  { %v1025_v16 = vadd.f32 %v1024_v13, %v895_v12 }
 0x19e   :  { %2579 = vst [vmem:[#allocation6 + $0x70] sm:$0xff] %v2519_v10   ;;  %v1649_v17 = vadd.f32 %v1648_v38, %v1152_v15 }
 0x1a0   :  { %v1660_v23 = vpop.f32.mrf.mxu3  ;;  %v1736_v24 = vadd.f32 %v3027_v3, %v1649_v17 }
 0x1a2   :  { %v1784_v27 = vmax.f32 %v1736_v24, 0.0 }
 0x1a3   :  { %v1153_v19 = vpop.f32.mrf.mxu2  ;;  %v898_v20 = vpop.f32.mrf.mxu0 }
 0x1a4   :  { %v1154_v21 = vadd.f32 %v1153_v19, %v1025_v16  ;;  %v1027_v22 = vpop.f32.mrf.mxu1 }
 0x1a5   :  { %v1028_v28 = vadd.f32 %v1027_v22, %v898_v20 }
 0x1a6   :  { %v1652_v25 = vadd.f32 %v1651_v50, %v1154_v21 }
 0x1a8   :  { %v1737_v26 = vadd.f32 %v3027_v3, %v1652_v25  ;;  %v1663_v34 = vpop.f32.mrf.mxu3 }
 0x1aa   :  { %v1785_v29 = vmax.f32 %v1737_v26, 0.0 }
 0x1ab   :  { %v1156_v30 = vpop.f32.mrf.mxu2  ;;  %v900_v32 = vpop.f32.mrf.mxu0 }
 0x1ac   :  { %v2524_v31 = vpack.c.bf16 %v1785_v29, %v1784_v27  ;;  %v1029_v33 = vpop.f32.mrf.mxu1  ;;  %v1157_v35 = vadd.f32 %v1156_v30, %v1028_v28 }
 0x1ad   :  { %v1030_v36 = vadd.f32 %v1029_v33, %v900_v32 }
 0x1ae   :  { %2580 = vst [vmem:[#allocation6 + $0x78] sm:$0xff] %v2524_v31   ;;  %v1655_v37 = vadd.f32 %v1654_v2, %v1157_v35 }
 0x1b0   :  { %v1666_v41 = vpop.f32.mrf.mxu3  ;;  %v1738_v43 = vadd.f32 %v3027_v3, %v1655_v37 }
 0x1b2   :  { %v1786_v46 = vmax.f32 %v1738_v43, 0.0 }
 0x1b3   :  { %v1158_v38 = vpop.f32.mrf.mxu2  ;;  %v903_v40 = vpop.f32.mrf.mxu0 }
 0x1b4   :  { %v1159_v39 = vadd.f32 %v1158_v38, %v1030_v36  ;;  %v1032_v42 = vpop.f32.mrf.mxu1 }
 0x1b5   :  { %v1033_v47 = vadd.f32 %v1032_v42, %v903_v40 }
 0x1b6   :  { %v1658_v44 = vadd.f32 %v1657_v14, %v1159_v39 }
 0x1b8   :  { %v1739_v45 = vadd.f32 %v3027_v3, %v1658_v44  ;;  %v1669_v54 = vpop.f32.mrf.mxu3 }
 0x1ba   :  { %v1787_v48 = vmax.f32 %v1739_v45, 0.0 }
 0x1bb   :  { %v1161_v49 = vpop.f32.mrf.mxu2  ;;  %v905_v51 = vpop.f32.mrf.mxu0 }
 0x1bc   :  { %v2529_v50 = vpack.c.bf16 %v1787_v48, %v1786_v46  ;;  %v1034_v52 = vpop.f32.mrf.mxu1  ;;  %v1162_v53 = vadd.f32 %v1161_v49, %v1033_v47 }
 0x1bd   :  { %v1035_v55 = vadd.f32 %v1034_v52, %v905_v51 }
 0x1be   :  { %2581 = vst [vmem:[#allocation6 + $0x80] sm:$0xff] %v2529_v50   ;;  %v1661_v56 = vadd.f32 %v1660_v23, %v1162_v53 }
 0x1c0   :  { %v1740_v60 = vadd.f32 %v3027_v3, %v1661_v56  ;;  %v1672_v63 = vpop.f32.mrf.mxu3 }
 0x1c2   :  { %v1788_v0 = vmax.f32 %v1740_v60, 0.0 }
 0x1c3   :  { %v1163_v57 = vpop.f32.mrf.mxu2  ;;  %v908_v58 = vpop.f32.mrf.mxu0 }
 0x1c4   :  { %v1164_v18 = vadd.f32 %v1163_v57, %v1035_v55  ;;  %v1037_v59 = vpop.f32.mrf.mxu1 }
 0x1c5   :  { %v1038_v1 = vadd.f32 %v1037_v59, %v908_v58 }
 0x1c6   :  { %v1664_v61 = vadd.f32 %v1663_v34, %v1164_v18 }
 0x1c8   :  { %v1741_v62 = vadd.f32 %v3027_v3, %v1664_v61  ;;  %v1675_v12 = vpop.f32.mrf.mxu3 }
 0x1ca   :  { %v1789_v2 = vmax.f32 %v1741_v62, 0.0 }
 0x1cb   :  { %v1166_v4 = vpop.f32.mrf.mxu2  ;;  %v910_v6 = vpop.f32.mrf.mxu0 }
 0x1cc   :  { %v2534_v5 = vpack.c.bf16 %v1789_v2, %v1788_v0  ;;  %v1039_v7 = vpop.f32.mrf.mxu1  ;;  %v1167_v8 = vadd.f32 %v1166_v4, %v1038_v1 }
 0x1cd   :  { %v1040_v9 = vadd.f32 %v1039_v7, %v910_v6 }
 0x1ce   :  { %2582 = vst [vmem:[#allocation6 + $0x88] sm:$0xff] %v2534_v5   ;;  %v1667_v11 = vadd.f32 %v1666_v41, %v1167_v8 }
 0x1d0   :  { %v1742_v16 = vadd.f32 %v3027_v3, %v1667_v11  ;;  %v1678_v27 = vpop.f32.mrf.mxu3 }
 0x1d2   :  { %v1790_v21 = vmax.f32 %v1742_v16, 0.0 }
 0x1d3   :  { %v1168_v10 = vpop.f32.mrf.mxu2  ;;  %v913_v14 = vpop.f32.mrf.mxu0 }
 0x1d4   :  { %v1169_v13 = vadd.f32 %v1168_v10, %v1040_v9  ;;  %v1042_v15 = vpop.f32.mrf.mxu1 }
 0x1d5   :  { %v1043_v20 = vadd.f32 %v1042_v15, %v913_v14 }
 0x1d6   :  { %v1670_v17 = vadd.f32 %v1669_v54, %v1169_v13 }
 0x1d8   :  { %v1743_v19 = vadd.f32 %v3027_v3, %v1670_v17  ;;  %v1681_v37 = vpop.f32.mrf.mxu3 }
 0x1da   :  { %v1791_v22 = vmax.f32 %v1743_v19, 0.0 }
 0x1db   :  { %v1171_v23 = vpop.f32.mrf.mxu2  ;;  %v915_v25 = vpop.f32.mrf.mxu0 }
 0x1dc   :  { %v2539_v24 = vpack.c.bf16 %v1791_v22, %v1790_v21  ;;  %v1044_v26 = vpop.f32.mrf.mxu1  ;;  %v1172_v28 = vadd.f32 %v1171_v23, %v1043_v20 }
 0x1dd   :  { %v1045_v29 = vadd.f32 %v1044_v26, %v915_v25 }
 0x1de   :  { %2583 = vst [vmem:[#allocation6 + $0x90] sm:$0xff] %v2539_v24   ;;  %v1673_v30 = vadd.f32 %v1672_v63, %v1172_v28 }
 0x1e0   :  { %v1744_v35 = vadd.f32 %v3027_v3, %v1673_v30  ;;  %v1684_v47 = vpop.f32.mrf.mxu3 }
 0x1e2   :  { %v1792_v39 = vmax.f32 %v1744_v35, 0.0 }
 0x1e3   :  { %v1173_v31 = vpop.f32.mrf.mxu2  ;;  %v918_v33 = vpop.f32.mrf.mxu0 }
 0x1e4   :  { %v1174_v32 = vadd.f32 %v1173_v31, %v1045_v29  ;;  %v1047_v34 = vpop.f32.mrf.mxu1 }
 0x1e5   :  { %v1048_v40 = vadd.f32 %v1047_v34, %v918_v33 }
 0x1e6   :  { %v1676_v36 = vadd.f32 %v1675_v12, %v1174_v32 }
 0x1e8   :  { %v1745_v38 = vadd.f32 %v3027_v3, %v1676_v36  ;;  %v1687_v60 = vpop.f32.mrf.mxu3 }
 0x1ea   :  { %v1793_v42 = vmax.f32 %v1745_v38, 0.0 }
 0x1eb   :  { %v1176_v41 = vpop.f32.mrf.mxu2  ;;  %v920_v44 = vpop.f32.mrf.mxu0 }
 0x1ec   :  { %v2544_v43 = vpack.c.bf16 %v1793_v42, %v1792_v39  ;;  %v1049_v45 = vpop.f32.mrf.mxu1  ;;  %v1177_v46 = vadd.f32 %v1176_v41, %v1048_v40 }
 0x1ed   :  { %v1050_v48 = vadd.f32 %v1049_v45, %v920_v44 }
 0x1ee   :  { %2584 = vst [vmem:[#allocation6 + $0x98] sm:$0xff] %v2544_v43   ;;  %v1679_v49 = vadd.f32 %v1678_v27, %v1177_v46 }
 0x1f0   :  { %v1746_v54 = vadd.f32 %v3027_v3, %v1679_v49  ;;  %v1690_v8 = vpop.f32.mrf.mxu3 }
 0x1f2   :  { %v1794_v57 = vmax.f32 %v1746_v54, 0.0 }
 0x1f3   :  { %v1178_v50 = vpop.f32.mrf.mxu2  ;;  %v923_v52 = vpop.f32.mrf.mxu0 }
 0x1f4   :  { %v1179_v51 = vadd.f32 %v1178_v50, %v1050_v48  ;;  %v1052_v53 = vpop.f32.mrf.mxu1 }
 0x1f5   :  { %v1053_v18 = vadd.f32 %v1052_v53, %v923_v52 }
 0x1f6   :  { %v1682_v55 = vadd.f32 %v1681_v37, %v1179_v51 }
 0x1f8   :  { %v1747_v56 = vadd.f32 %v3027_v3, %v1682_v55  ;;  %v1693_v20 = vpop.f32.mrf.mxu3 }
 0x1fa   :  { %v1795_v58 = vmax.f32 %v1747_v56, 0.0 }
 0x1fb   :  { %v1181_v59 = vpop.f32.mrf.mxu2  ;;  %v925_v62 = vpop.f32.mrf.mxu0 }
 0x1fc   :  { %v2549_v61 = vpack.c.bf16 %v1795_v58, %v1794_v57  ;;  %v1054_v63 = vpop.f32.mrf.mxu1  ;;  %v1182_v0 = vadd.f32 %v1181_v59, %v1053_v18 }
 0x1fd   :  { %v1055_v1 = vadd.f32 %v1054_v63, %v925_v62 }
 0x1fe   :  { %2585 = vst [vmem:[#allocation6 + $0xa0] sm:$0xff] %v2549_v61   ;;  %v1685_v2 = vadd.f32 %v1684_v47, %v1182_v0 }
 0x200   :  { %v1748_v9 = vadd.f32 %v3027_v3, %v1685_v2  ;;  %v1696_v31 = vpop.f32.mrf.mxu3 }
 0x202   :  { %v1796_v12 = vmax.f32 %v1748_v9, 0.0 }
 0x203   :  { %v1183_v4 = vpop.f32.mrf.mxu2  ;;  %v928_v6 = vpop.f32.mrf.mxu0 }
 0x204   :  { %v1184_v5 = vadd.f32 %v1183_v4, %v1055_v1  ;;  %v1057_v7 = vpop.f32.mrf.mxu1 }
 0x205   :  { %v1058_v13 = vadd.f32 %v1057_v7, %v928_v6 }
 0x206   :  { %v1688_v11 = vadd.f32 %v1687_v60, %v1184_v5 }
 0x208   :  { %v1749_v10 = vadd.f32 %v3027_v3, %v1688_v11  ;;  %v1699_v43 = vpop.f32.mrf.mxu3 }
 0x20a   :  { %v1797_v14 = vmax.f32 %v1749_v10, 0.0 }
 0x20b   :  { %v1186_v15 = vpop.f32.mrf.mxu2  ;;  %v930_v17 = vpop.f32.mrf.mxu0 }
 0x20c   :  { %v2554_v16 = vpack.c.bf16 %v1797_v14, %v1796_v12  ;;  %v1059_v19 = vpop.f32.mrf.mxu1  ;;  %v1187_v21 = vadd.f32 %v1186_v15, %v1058_v13 }
 0x20d   :  { %v1060_v22 = vadd.f32 %v1059_v19, %v930_v17 }
 0x20e   :  { %2586 = vst [vmem:[#allocation6 + $0xa8] sm:$0xff] %v2554_v16   ;;  %v1691_v23 = vadd.f32 %v1690_v8, %v1187_v21 }
 0x210   :  { %v1750_v28 = vadd.f32 %v3027_v3, %v1691_v23 }
 0x212   :  { %v1798_v32 = vmax.f32 %v1750_v28, 0.0 }
 0x213   :  { %v1188_v24 = vpop.f32.mrf.mxu2  ;;  %v933_v26 = vpop.f32.mrf.mxu0 }
 0x214   :  { %v1189_v25 = vadd.f32 %v1188_v24, %v1060_v22  ;;  %v1062_v27 = vpop.f32.mrf.mxu1 }
 0x215   :  { %v1063_v33 = vadd.f32 %v1062_v27, %v933_v26 }
 0x216   :  { %v1694_v29 = vadd.f32 %v1693_v20, %v1189_v25 }
 0x218   :  { %v1751_v30 = vadd.f32 %v3027_v3, %v1694_v29 }
 0x21a   :  { %v1799_v34 = vmax.f32 %v1751_v30, 0.0 }
 0x21b   :  { %v1191_v35 = vpop.f32.mrf.mxu2  ;;  %v935_v38 = vpop.f32.mrf.mxu0 }
 0x21c   :  { %v2559_v36 = vpack.c.bf16 %v1799_v34, %v1798_v32  ;;  %v1192_v37 = vadd.f32 %v1191_v35, %v1063_v33  ;;  %v1064_v39 = vpop.f32.mrf.mxu1 }
 0x21d   :  { %v1065_v40 = vadd.f32 %v1064_v39, %v935_v38 }
 0x21e   :  { %2587 = vst [vmem:[#allocation6 + $0xb0] sm:$0xff] %v2559_v36   ;;  %v1697_v42 = vadd.f32 %v1696_v31, %v1192_v37 }
 0x220   :  { %v1752_v45 = vadd.f32 %v3027_v3, %v1697_v42 }
 0x222   :  { %v1800_v48 = vmax.f32 %v1752_v45, 0.0 }
 0x223   :  { %v1193_v41 = vpop.f32.mrf.mxu2 }
 0x224   :  { %v1194_v44 = vadd.f32 %v1193_v41, %v1065_v40 }
 0x226   :  { %v1700_v46 = vadd.f32 %v1699_v43, %v1194_v44 }
 0x228   :  { %v1753_v47 = vadd.f32 %v3027_v3, %v1700_v46 }
 0x22a   :  { %v1801_v49 = vmax.f32 %v1753_v47, 0.0 }
 0x22c   :  { %v2564_v50 = vpack.c.bf16 %v1801_v49, %v1800_v48 }
 0x22e   :  { %2588 = vst [vmem:[#allocation6 + $0xb8] sm:$0xff] %v2564_v50  }
 0x22f   :  { %1910 = dma.vmem_to_hbm [thread:$0]  %s1903_s9, 3072, %s1905_s12, [#allocation5], %s2653_s13, %s2653_s13, %s2654_s14  }
 0x230   :  { %2647 = dma.done.wait [#allocation5], 3072  }
 0x231   :  { %2648 = vsyncadd [#allocation5], 4294964224 }
 0x232   :  { %1915 = vsyncpa [#allocation4], 1 }
 0x233   :  { %1916 = vsyncpa [#allocation5], 1 }

</bundles_post_ra>
